<compile_context>
chip_gen: v7x
topology: tpu7x:2x2x1
jax: 0.10.0
libtpu: 0.0.40
codegen_flags: <defaults>
</compile_context>

<pallas_src>
import jax
import jax.numpy as jnp
from jax.experimental import pallas as pl
from jax.experimental.pallas import tpu as pltpu

EPS = 1e-5
NEG_SLOPE = 0.17

# True layer sizes of the PyTorch model: 17 -> 87 -> 128 -> 526 -> 2.
DIMS = [(17, 87), (87, 128), (128, 526), (526, 2)]
# Lane-dense padded sizes used inside the kernels.
PAD_IN, PAD_F1, PAD_F2, PAD_F3, PAD_OUT = 128, 128, 128, 640, 128
SLAB_W = PAD_F3     # width of the per-feature vector slab
SLAB_ROWS = 16      # rows: g1,be1,g2,be2,g3,be3,b4,0,w4c0,w4c1,0,...


# ---------------------------------------------------------------------------
# Shared in-kernel helpers
# ---------------------------------------------------------------------------

def _scale_shift(gamma, beta, mean, var):
    """Fold BN into y*scale + shift == gamma*(y-mean)*rsqrt(var+eps) + beta."""
    scale = gamma * jax.lax.rsqrt(var + EPS)      # rsqrt -> EUP slot
    shift = beta - mean * scale
    return scale, shift


def _lrelu_bf16(y):
    """LeakyReLU(0.17) fused with the bf16 pack feeding the next MXU/VPU stage."""
    return jnp.where(y >= 0.0, y, NEG_SLOPE * y).astype(jnp.bfloat16)


def _head_vpu(h3, w4c0, w4c1, b4):
    """Layer 4 (526 -> 2) on the VPU/XLU: two broadcast multiplies + lane
    reductions; results placed into lanes 0..1 of a lane-dense (rows,128) slab."""
    o0 = jnp.sum(h3 * w4c0, axis=-1, keepdims=True)            # (rows, 1) f32
    o1 = jnp.sum(h3 * w4c1, axis=-1, keepdims=True)
    lane = jax.lax.broadcasted_iota(jnp.int32, (h3.shape[0], PAD_OUT), 1)
    out = jnp.where(lane == 0, o0, jnp.where(lane == 1, o1, 0.0))
    return out + b4                                            # bias lives in lanes 0,1


# ---------------------------------------------------------------------------
# Path A: single fused kernel (whole batch resident in VMEM) — small/medium B
# ---------------------------------------------------------------------------

def _batch_bn_lrelu_bf16(y, gamma, beta):
    """Train-mode BN over the full in-VMEM batch + LeakyReLU, produced in bf16."""
    inv_b = 1.0 / y.shape[0]
    mean = jnp.sum(y, axis=0, keepdims=True) * inv_b
    var = jnp.maximum(jnp.sum(y * y, axis=0, keepdims=True) * inv_b
                      - mean * mean, 0.0)
    scale, shift = _scale_shift(gamma, beta, mean, var)
    return _lrelu_bf16(y * scale + shift)


def mlp_fused_kernel(x_ref, w1_ref, w2_ref, w3_ref, vec_ref, o_ref):
    g1, be1 = vec_ref[0:1, 0:PAD_F1], vec_ref[1:2, 0:PAD_F1]
    g2, be2 = vec_ref[2:3, 0:PAD_F2], vec_ref[3:4, 0:PAD_F2]
    g3, be3 = vec_ref[4:5, 0:PAD_F3], vec_ref[5:6, 0:PAD_F3]
    b4 = vec_ref[6:7, 0:PAD_OUT]
    w4c0, w4c1 = vec_ref[8:9, :], vec_ref[9:10, :]

    x = x_ref[...]                                             # (B, 128) f32
    # Layer 1 stays f32 (K=17; negligible MXU cost, better precision pre-BN).
    y1 = jnp.dot(x, w1_ref[...], preferred_element_type=jnp.float32)
    h1 = _batch_bn_lrelu_bf16(y1, g1, be1)
    y2 = jnp.dot(h1, w2_ref[...], preferred_element_type=jnp.float32)
    h2 = _batch_bn_lrelu_bf16(y2, g2, be2)
    y3 = jnp.dot(h2, w3_ref[...], preferred_element_type=jnp.float32)
    h3 = _batch_bn_lrelu_bf16(y3, g3, be3)
    o_ref[...] = _head_vpu(h3, w4c0, w4c1, b4).astype(o_ref.dtype)


# ---------------------------------------------------------------------------
# Path B: batch-gridded two-pass BN (4 streaming stages) — large B
# ---------------------------------------------------------------------------

def _accum_stats(stats_ref, y):
    """Accumulate per-feature sum / sum-of-squares into a resident (8,F) output."""
    @pl.when(pl.program_id(0) == 0)
    def _():
        stats_ref[...] = jnp.zeros_like(stats_ref)
    stats_ref[0:1, :] += jnp.sum(y, axis=0, keepdims=True)
    stats_ref[1:2, :] += jnp.sum(y * y, axis=0, keepdims=True)


def stage1_kernel(x_ref, w1_ref, y_ref, stats_ref):
    y = jnp.dot(x_ref[...], w1_ref[...], preferred_element_type=jnp.float32)
    y_ref[...] = y
    _accum_stats(stats_ref, y)


def make_mid_kernel(g_row, f_in, inv_b):
    """Normalize the previous layer (stats already reduced over the full batch),
    LeakyReLU -> bf16, matmul into the next layer, accumulate its statistics."""
    def kernel(y_in_ref, stats_in_ref, vec_ref, w_ref, y_ref, stats_ref):
        gamma = vec_ref[g_row:g_row + 1, 0:f_in]
        beta = vec_ref[g_row + 1:g_row + 2, 0:f_in]
        mean = stats_in_ref[0:1, :] * inv_b
        var = jnp.maximum(stats_in_ref[1:2, :] * inv_b - mean * mean, 0.0)
        scale, shift = _scale_shift(gamma, beta, mean, var)
        h = _lrelu_bf16(y_in_ref[...] * scale + shift)
        y = jnp.dot(h, w_ref[...], preferred_element_type=jnp.float32)
        y_ref[...] = y
        _accum_stats(stats_ref, y)
    return kernel


def make_head_kernel(inv_b):
    """Normalize layer 3, LeakyReLU, run the 526->2 head on the VPU."""
    def kernel(y3_ref, stats3_ref, vec_ref, o_ref):
        g3, be3 = vec_ref[4:5, 0:PAD_F3], vec_ref[5:6, 0:PAD_F3]
        b4 = vec_ref[6:7, 0:PAD_OUT]
        w4c0, w4c1 = vec_ref[8:9, :], vec_ref[9:10, :]
        mean = stats3_ref[0:1, :] * inv_b
        var = jnp.maximum(stats3_ref[1:2, :] * inv_b - mean * mean, 0.0)
        scale, shift = _scale_shift(g3, be3, mean, var)
        h3 = _lrelu_bf16(y3_ref[...] * scale + shift)
        o_ref[...] = _head_vpu(h3, w4c0, w4c1, b4).astype(o_ref.dtype)
    return kernel


# ---------------------------------------------------------------------------
# Parameter packing / wrappers
# ---------------------------------------------------------------------------

def _pad2d(a, rows, cols, value=0.0):
    return jnp.pad(a, ((0, rows - a.shape[0]), (0, cols - a.shape[1])),
                   constant_values=value)


def prep_params(params):
    """Pad weights lane-dense and pack per-feature vectors + w4's two columns.
    Padded weight entries are 0, padded gamma lanes 1, padded beta lanes 0, so
    padded activation lanes stay exactly 0 (required BN invariant)."""
    w1 = _pad2d(params["w1"], PAD_IN, PAD_F1)                      # f32 (layer-1 precision)
    w2 = _pad2d(params["w2"], PAD_F1, PAD_F2).astype(jnp.bfloat16)
    w3 = _pad2d(params["w3"], PAD_F2, PAD_F3).astype(jnp.bfloat16)

    def row(v, fill=0.0):
        return _pad2d(jnp.asarray(v, jnp.float32).reshape(1, -1), 1, SLAB_W,
                      value=fill)

    zero = jnp.zeros((1, SLAB_W), jnp.float32)
    w4t = params["w4"].T                                           # (2, 526)
    vec = jnp.concatenate([
        row(params["g1"], 1.0), row(params["be1"]),
        row(params["g2"], 1.0), row(params["be2"]),
        row(params["g3"], 1.0), row(params["be3"]),
        row(params["b4"]), zero,
        row(w4t[0]), row(w4t[1]),
        zero, zero, zero, zero, zero, zero,
    ], axis=0)                                                     # (16, 640) f32
    return w1, w2, w3, vec


def _vmem_limit_bytes(rows):
    """Scoped-VMEM limit from actual buffer bytes (weights + slab + per-row
    activations), x4 slack for double-buffering/temporaries, clamped to
    [16 MiB, 32 MiB]."""
    weight_bytes = (PAD_IN * PAD_F1) * 4 + (PAD_F1 * PAD_F2 + PAD_F2 * PAD_F3) * 2
    weight_bytes += SLAB_ROWS * SLAB_W * 4 + 2 * 8 * PAD_F3 * 4
    act_bytes = rows * (PAD_IN + PAD_F1 + PAD_F2 + 2 * PAD_F3 + PAD_OUT) * 4
    est = 4 * (weight_bytes + act_bytes)
    return int(min(32 << 20, max(16 << 20, est)))


def _forward_fused(x_pad, w1, w2, w3, vec):
    B = x_pad.shape[0]
    vmem = pl.BlockSpec(memory_space=pltpu.MemorySpace.VMEM)
    return pl.pallas_call(
        mlp_fused_kernel,
        out_shape=jax.ShapeDtypeStruct((B, PAD_OUT), jnp.bfloat16),
        in_specs=[vmem] * 5,
        out_specs=vmem,
        compiler_params=pltpu.CompilerParams(
            vmem_limit_bytes=_vmem_limit_bytes(B)),
    )(x_pad, w1, w2, w3, vec)


def _forward_tiled(x_pad, w1, w2, w3, vec, tm):
    """Batch-gridded two-pass BatchNorm: each stage streams (tm, F) tiles,
    accumulating that layer's sum/sumsq into a resident (8, F) output, and the
    following stage normalizes per tile with the reduced statistics."""
    B = x_pad.shape[0]
    assert B % tm == 0, "tiled path requires the batch tile to divide B"
    n_tiles = B // tm
    inv_b = 1.0 / B
    vlim = _vmem_limit_bytes(tm)

    def tile_spec(f):
        return pl.BlockSpec((tm, f), lambda i: (i, 0))

    def const_spec(shape):
        return pl.BlockSpec(shape, lambda i: (0, 0))   # resident across the grid

    def cparams(sem):
        return pltpu.CompilerParams(dimension_semantics=(sem,),
                                    vmem_limit_bytes=vlim)

    # Stage 1: y1 = x @ w1  (+ layer-1 batch stats).  f32 matmul for precision.
    y1, s1 = pl.pallas_call(
        stage1_kernel,
        out_shape=(jax.ShapeDtypeStruct((B, PAD_F1), jnp.float32),
                   jax.ShapeDtypeStruct((8, PAD_F1), jnp.float32)),
        grid=(n_tiles,),
        in_specs=[tile_spec(PAD_IN), const_spec((PAD_IN, PAD_F1))],
        out_specs=(tile_spec(PAD_F1), const_spec((8, PAD_F1))),
        compiler_params=cparams("arbitrary"),
    )(x_pad, w1)

    # Stage 2: BN1 + LeakyReLU + y2 = h1 @ w2  (+ layer-2 stats).
    y2, s2 = pl.pallas_call(
        make_mid_kernel(0, PAD_F1, inv_b),
        out_shape=(jax.ShapeDtypeStruct((B, PAD_F2), jnp.float32),
                   jax.ShapeDtypeStruct((8, PAD_F2), jnp.float32)),
        grid=(n_tiles,),
        in_specs=[tile_spec(PAD_F1), const_spec((8, PAD_F1)),
                  const_spec((SLAB_ROWS, SLAB_W)), const_spec((PAD_F1, PAD_F2))],
        out_specs=(tile_spec(PAD_F2), const_spec((8, PAD_F2))),
        compiler_params=cparams("arbitrary"),
    )(y1, s1, vec, w2)

    # Stage 3: BN2 + LeakyReLU + y3 = h2 @ w3  (+ layer-3 stats).
    y3, s3 = pl.pallas_call(
        make_mid_kernel(2, PAD_F2, inv_b),
        out_shape=(jax.ShapeDtypeStruct((B, PAD_F3), jnp.float32),
                   jax.ShapeDtypeStruct((8, PAD_F3), jnp.float32)),
        grid=(n_tiles,),
        in_specs=[tile_spec(PAD_F2), const_spec((8, PAD_F2)),
                  const_spec((SLAB_ROWS, SLAB_W)), const_spec((PAD_F2, PAD_F3))],
        out_specs=(tile_spec(PAD_F3), const_spec((8, PAD_F3))),
        compiler_params=cparams("arbitrary"),
    )(y2, s2, vec, w3)

    # Stage 4: BN3 + LeakyReLU + VPU head.  No accumulator -> batch axis is
    # "parallel" so it can shard across v7x's two TensorCores.
    return pl.pallas_call(
        make_head_kernel(inv_b),
        out_shape=jax.ShapeDtypeStruct((B, PAD_OUT), jnp.bfloat16),
        grid=(n_tiles,),
        in_specs=[tile_spec(PAD_F3), const_spec((8, PAD_F3)),
                  const_spec((SLAB_ROWS, SLAB_W))],
        out_specs=tile_spec(PAD_OUT),
        compiler_params=cparams("parallel"),
    )(y3, s3, vec)


def mlp_forward(x, params, *, batch_tile=256):
    """x: (B, 17) float32.  Returns (B, 2, 1, 1) float32.

    batch_tile: rows per grid step for the gridded two-pass BN path (>=256 for
    v6e/v7x MXU height, >=128 is enough on v5e).  The single fused kernel is
    used when B is small or does not divide evenly by the tile."""
    B = x.shape[0]
    w1, w2, w3, vec = prep_params(params)
    x_pad = jnp.pad(x, ((0, 0), (0, PAD_IN - x.shape[1])))     # f32, zero pad lanes
    if B > batch_tile and B % batch_tile == 0:
        out = _forward_tiled(x_pad, w1, w2, w3, vec, batch_tile)
    else:
        # TODO(synk): masked statistics for a ragged final batch tile so large,
        # non-multiple batches can also use the gridded path.
        out = _forward_fused(x_pad, w1, w2, w3, vec)
    # .float().unsqueeze(2).unsqueeze(3)
    return out[:, :2].astype(jnp.float32).reshape(B, 2, 1, 1)


# ---------------------------------------------------------------------------
# Pure-JAX reference and PyTorch-style init
# ---------------------------------------------------------------------------

def mlp_reference(x, params):
    """Pure-JAX f32 reference of the PyTorch module (with biases, two-pass BN)."""
    h = x
    for i in range(1, 4):
        y = h @ params[f"w{i}"] + params[f"b{i}"]
        mean = jnp.mean(y, axis=0, keepdims=True)
        var = jnp.mean((y - mean) ** 2, axis=0, keepdims=True)
        y = (y - mean) * jax.lax.rsqrt(var + EPS) * params[f"g{i}"] + params[f"be{i}"]
        h = jnp.where(y >= 0.0, y, NEG_SLOPE * y)
    out = h @ params["w4"] + params["b4"]
    return out.reshape(x.shape[0], 2, 1, 1)


def init_params(key):
    """PyTorch Linear default init U(-1/sqrt(fan_in), +), BN gamma=1, beta=0.
    Weights stored as (in, out)."""
    params = {}
    keys = jax.random.split(key, 2 * len(DIMS))
    for i, (fan_in, fan_out) in enumerate(DIMS):
        bound = 1.0 / jnp.sqrt(float(fan_in))
        params[f"w{i + 1}"] = jax.random.uniform(
            keys[2 * i], (fan_in, fan_out), minval=-bound, maxval=bound,
            dtype=jnp.float32)
        params[f"b{i + 1}"] = jax.random.uniform(
            keys[2 * i + 1], (1, fan_out), minval=-bound, maxval=bound,
            dtype=jnp.float32)
        if i < 3:   # BN after the first three Linear layers only
            params[f"g{i + 1}"] = jnp.ones((1, fan_out), jnp.float32)
            params[f"be{i + 1}"] = jnp.zeros((1, fan_out), jnp.float32)
    return params


if __name__ == "__main__":
    key = jax.random.PRNGKey(0)
    k_x, k_x2, k_p = jax.random.split(key, 3)
    params = init_params(k_p)

    # Small batch -> single fused kernel (latency-bound regime).
    B = 64
    x = jax.random.normal(k_x, (B, 17), dtype=jnp.float32)
    y = jax.block_until_ready(mlp_forward(x, params))
    assert y.shape == (B, 2, 1, 1), y.shape
    assert y.dtype == jnp.float32, y.dtype
    y_ref = mlp_reference(x, params)
    assert jnp.allclose(y, y_ref, atol=1e-1, rtol=1e-1), \
        float(jnp.max(jnp.abs(y - y_ref)))

    # Larger batch -> gridded two-pass BN path (256-row tiles, resident weights).
    B2 = 512
    x2 = jax.random.normal(k_x2, (B2, 17), dtype=jnp.float32)
    y2 = jax.block_until_ready(mlp_forward(x2, params, batch_tile=256))
    assert y2.shape == (B2, 2, 1, 1), y2.shape
    y2_ref = mlp_reference(x2, params)
    assert jnp.allclose(y2, y2_ref, atol=1e-1, rtol=1e-1), \
        float(jnp.max(jnp.abs(y2 - y2_ref)))

    print("KERNEL_OK")
</pallas_src>

<mosaic_0001>
module attributes {stable_mosaic.version = 11 : i64} {
  func.func @mlp_fused_kernel(%arg0: memref<64x128xf32, #tpu.memory_space<vmem>>, %arg1: memref<128x128xf32, #tpu.memory_space<vmem>>, %arg2: memref<128x128xbf16, #tpu.memory_space<vmem>>, %arg3: memref<128x640xbf16, #tpu.memory_space<vmem>>, %arg4: memref<16x640xf32, #tpu.memory_space<vmem>>, %arg5: memref<64x128xbf16, #tpu.memory_space<vmem>>) attributes {dimension_semantics = [], scalar_prefetch = 0 : i64, scratch_operands = 0 : i64, tpu.core_type = #tpu.core_type<tc>} {
    %c0 = arith.constant 0 : index
    %c0_0 = arith.constant 0 : index
    %0 = vector.load %arg4[%c0, %c0_0] : memref<16x640xf32, #tpu.memory_space<vmem>>, vector<1x128xf32>
    %c1 = arith.constant 1 : index
    %c0_1 = arith.constant 0 : index
    %1 = vector.load %arg4[%c1, %c0_1] : memref<16x640xf32, #tpu.memory_space<vmem>>, vector<1x128xf32>
    %c2 = arith.constant 2 : index
    %c0_2 = arith.constant 0 : index
    %2 = vector.load %arg4[%c2, %c0_2] : memref<16x640xf32, #tpu.memory_space<vmem>>, vector<1x128xf32>
    %c3 = arith.constant 3 : index
    %c0_3 = arith.constant 0 : index
    %3 = vector.load %arg4[%c3, %c0_3] : memref<16x640xf32, #tpu.memory_space<vmem>>, vector<1x128xf32>
    %c4 = arith.constant 4 : index
    %c0_4 = arith.constant 0 : index
    %4 = vector.load %arg4[%c4, %c0_4] : memref<16x640xf32, #tpu.memory_space<vmem>>, vector<1x640xf32>
    %c5 = arith.constant 5 : index
    %c0_5 = arith.constant 0 : index
    %5 = vector.load %arg4[%c5, %c0_5] : memref<16x640xf32, #tpu.memory_space<vmem>>, vector<1x640xf32>
    %c6 = arith.constant 6 : index
    %c0_6 = arith.constant 0 : index
    %6 = vector.load %arg4[%c6, %c0_6] : memref<16x640xf32, #tpu.memory_space<vmem>>, vector<1x128xf32>
    %c8 = arith.constant 8 : index
    %c0_7 = arith.constant 0 : index
    %7 = vector.load %arg4[%c8, %c0_7] : memref<16x640xf32, #tpu.memory_space<vmem>>, vector<1x640xf32>
    %c9 = arith.constant 9 : index
    %c0_8 = arith.constant 0 : index
    %8 = vector.load %arg4[%c9, %c0_8] : memref<16x640xf32, #tpu.memory_space<vmem>>, vector<1x640xf32>
    %c0_9 = arith.constant 0 : index
    %c0_10 = arith.constant 0 : index
    %9 = vector.load %arg0[%c0_9, %c0_10] : memref<64x128xf32, #tpu.memory_space<vmem>>, vector<64x128xf32>
    %c0_11 = arith.constant 0 : index
    %c0_12 = arith.constant 0 : index
    %10 = vector.load %arg1[%c0_11, %c0_12] : memref<128x128xf32, #tpu.memory_space<vmem>>, vector<128x128xf32>
    %cst = arith.constant dense<0.000000e+00> : vector<64x128xf32>
    %11 = tpu.matmul %9, %10, %cst {dimension_numbers = #tpu.dot_dimension_numbers<[1], [0], [0], [1], [0, 0, 1, 1], [], []>} : vector<64x128xf32>, vector<128x128xf32>, vector<64x128xf32> -> vector<64x128xf32>
    %cst_13 = arith.constant dense<0.000000e+00> : vector<128xf32>
    %12 = vector.multi_reduction <add>, %11, %cst_13 [0] : vector<64x128xf32> to vector<128xf32>
    %13 = vector.shape_cast %12 : vector<128xf32> to vector<1x128xf32>
    %cst_14 = arith.constant 1.562500e-02 : f32
    %14 = vector.broadcast %cst_14 : f32 to vector<1x128xf32>
    %15 = arith.mulf %13, %14 : vector<1x128xf32>
    %16 = arith.mulf %11, %11 : vector<64x128xf32>
    %cst_15 = arith.constant dense<0.000000e+00> : vector<128xf32>
    %17 = vector.multi_reduction <add>, %16, %cst_15 [0] : vector<64x128xf32> to vector<128xf32>
    %18 = vector.shape_cast %17 : vector<128xf32> to vector<1x128xf32>
    %cst_16 = arith.constant 1.562500e-02 : f32
    %19 = vector.broadcast %cst_16 : f32 to vector<1x128xf32>
    %20 = arith.mulf %18, %19 : vector<1x128xf32>
    %21 = arith.mulf %15, %15 : vector<1x128xf32>
    %22 = arith.subf %20, %21 : vector<1x128xf32>
    %cst_17 = arith.constant 0.000000e+00 : f32
    %23 = vector.broadcast %cst_17 : f32 to vector<1x128xf32>
    %24 = arith.maximumf %22, %23 : vector<1x128xf32>
    %cst_18 = arith.constant 9.99999974E-6 : f32
    %25 = vector.broadcast %cst_18 : f32 to vector<1x128xf32>
    %26 = arith.addf %24, %25 : vector<1x128xf32>
    %27 = math.rsqrt %26 : vector<1x128xf32>
    %28 = arith.mulf %0, %27 : vector<1x128xf32>
    %29 = arith.mulf %15, %28 : vector<1x128xf32>
    %30 = arith.subf %1, %29 : vector<1x128xf32>
    %31 = vector.broadcast %28 : vector<1x128xf32> to vector<64x128xf32>
    %32 = arith.mulf %11, %31 : vector<64x128xf32>
    %33 = vector.broadcast %30 : vector<1x128xf32> to vector<64x128xf32>
    %34 = arith.addf %32, %33 : vector<64x128xf32>
    %cst_19 = arith.constant 0.000000e+00 : f32
    %35 = vector.broadcast %cst_19 : f32 to vector<64x128xf32>
    %36 = arith.cmpf oge, %34, %35 : vector<64x128xf32>
    %cst_20 = arith.constant 1.700000e-01 : f32
    %37 = vector.broadcast %cst_20 : f32 to vector<64x128xf32>
    %38 = arith.mulf %37, %34 : vector<64x128xf32>
    %39 = arith.select %36, %34, %38 : vector<64x128xi1>, vector<64x128xf32>
    %40 = arith.truncf %39 : vector<64x128xf32> to vector<64x128xbf16>
    %c0_21 = arith.constant 0 : index
    %c0_22 = arith.constant 0 : index
    %41 = vector.load %arg2[%c0_21, %c0_22] : memref<128x128xbf16, #tpu.memory_space<vmem>>, vector<128x128xbf16>
    %cst_23 = arith.constant dense<0.000000e+00> : vector<64x128xf32>
    %42 = tpu.matmul %40, %41, %cst_23 {dimension_numbers = #tpu.dot_dimension_numbers<[1], [0], [0], [1], [0, 0, 1, 1], [], []>} : vector<64x128xbf16>, vector<128x128xbf16>, vector<64x128xf32> -> vector<64x128xf32>
    %cst_24 = arith.constant dense<0.000000e+00> : vector<128xf32>
    %43 = vector.multi_reduction <add>, %42, %cst_24 [0] : vector<64x128xf32> to vector<128xf32>
    %44 = vector.shape_cast %43 : vector<128xf32> to vector<1x128xf32>
    %cst_25 = arith.constant 1.562500e-02 : f32
    %45 = vector.broadcast %cst_25 : f32 to vector<1x128xf32>
    %46 = arith.mulf %44, %45 : vector<1x128xf32>
    %47 = arith.mulf %42, %42 : vector<64x128xf32>
    %cst_26 = arith.constant dense<0.000000e+00> : vector<128xf32>
    %48 = vector.multi_reduction <add>, %47, %cst_26 [0] : vector<64x128xf32> to vector<128xf32>
    %49 = vector.shape_cast %48 : vector<128xf32> to vector<1x128xf32>
    %cst_27 = arith.constant 1.562500e-02 : f32
    %50 = vector.broadcast %cst_27 : f32 to vector<1x128xf32>
    %51 = arith.mulf %49, %50 : vector<1x128xf32>
    %52 = arith.mulf %46, %46 : vector<1x128xf32>
    %53 = arith.subf %51, %52 : vector<1x128xf32>
    %cst_28 = arith.constant 0.000000e+00 : f32
    %54 = vector.broadcast %cst_28 : f32 to vector<1x128xf32>
    %55 = arith.maximumf %53, %54 : vector<1x128xf32>
    %cst_29 = arith.constant 9.99999974E-6 : f32
    %56 = vector.broadcast %cst_29 : f32 to vector<1x128xf32>
    %57 = arith.addf %55, %56 : vector<1x128xf32>
    %58 = math.rsqrt %57 : vector<1x128xf32>
    %59 = arith.mulf %2, %58 : vector<1x128xf32>
    %60 = arith.mulf %46, %59 : vector<1x128xf32>
    %61 = arith.subf %3, %60 : vector<1x128xf32>
    %62 = vector.broadcast %59 : vector<1x128xf32> to vector<64x128xf32>
    %63 = arith.mulf %42, %62 : vector<64x128xf32>
    %64 = vector.broadcast %61 : vector<1x128xf32> to vector<64x128xf32>
    %65 = arith.addf %63, %64 : vector<64x128xf32>
    %cst_30 = arith.constant 0.000000e+00 : f32
    %66 = vector.broadcast %cst_30 : f32 to vector<64x128xf32>
    %67 = arith.cmpf oge, %65, %66 : vector<64x128xf32>
    %cst_31 = arith.constant 1.700000e-01 : f32
    %68 = vector.broadcast %cst_31 : f32 to vector<64x128xf32>
    %69 = arith.mulf %68, %65 : vector<64x128xf32>
    %70 = arith.select %67, %65, %69 : vector<64x128xi1>, vector<64x128xf32>
    %71 = arith.truncf %70 : vector<64x128xf32> to vector<64x128xbf16>
    %c0_32 = arith.constant 0 : index
    %c0_33 = arith.constant 0 : index
    %72 = vector.load %arg3[%c0_32, %c0_33] : memref<128x640xbf16, #tpu.memory_space<vmem>>, vector<128x640xbf16>
    %cst_34 = arith.constant dense<0.000000e+00> : vector<64x640xf32>
    %73 = tpu.matmul %71, %72, %cst_34 {dimension_numbers = #tpu.dot_dimension_numbers<[1], [0], [0], [1], [0, 0, 1, 1], [], []>} : vector<64x128xbf16>, vector<128x640xbf16>, vector<64x640xf32> -> vector<64x640xf32>
    %cst_35 = arith.constant dense<0.000000e+00> : vector<640xf32>
    %74 = vector.multi_reduction <add>, %73, %cst_35 [0] : vector<64x640xf32> to vector<640xf32>
    %75 = vector.shape_cast %74 : vector<640xf32> to vector<1x640xf32>
    %cst_36 = arith.constant 1.562500e-02 : f32
    %76 = vector.broadcast %cst_36 : f32 to vector<1x640xf32>
    %77 = arith.mulf %75, %76 : vector<1x640xf32>
    %78 = arith.mulf %73, %73 : vector<64x640xf32>
    %cst_37 = arith.constant dense<0.000000e+00> : vector<640xf32>
    %79 = vector.multi_reduction <add>, %78, %cst_37 [0] : vector<64x640xf32> to vector<640xf32>
    %80 = vector.shape_cast %79 : vector<640xf32> to vector<1x640xf32>
    %cst_38 = arith.constant 1.562500e-02 : f32
    %81 = vector.broadcast %cst_38 : f32 to vector<1x640xf32>
    %82 = arith.mulf %80, %81 : vector<1x640xf32>
    %83 = arith.mulf %77, %77 : vector<1x640xf32>
    %84 = arith.subf %82, %83 : vector<1x640xf32>
    %cst_39 = arith.constant 0.000000e+00 : f32
    %85 = vector.broadcast %cst_39 : f32 to vector<1x640xf32>
    %86 = arith.maximumf %84, %85 : vector<1x640xf32>
    %cst_40 = arith.constant 9.99999974E-6 : f32
    %87 = vector.broadcast %cst_40 : f32 to vector<1x640xf32>
    %88 = arith.addf %86, %87 : vector<1x640xf32>
    %89 = math.rsqrt %88 : vector<1x640xf32>
    %90 = arith.mulf %4, %89 : vector<1x640xf32>
    %91 = arith.mulf %77, %90 : vector<1x640xf32>
    %92 = arith.subf %5, %91 : vector<1x640xf32>
    %93 = vector.broadcast %90 : vector<1x640xf32> to vector<64x640xf32>
    %94 = arith.mulf %73, %93 : vector<64x640xf32>
    %95 = vector.broadcast %92 : vector<1x640xf32> to vector<64x640xf32>
    %96 = arith.addf %94, %95 : vector<64x640xf32>
    %cst_41 = arith.constant 0.000000e+00 : f32
    %97 = vector.broadcast %cst_41 : f32 to vector<64x640xf32>
    %98 = arith.cmpf oge, %96, %97 : vector<64x640xf32>
    %cst_42 = arith.constant 1.700000e-01 : f32
    %99 = vector.broadcast %cst_42 : f32 to vector<64x640xf32>
    %100 = arith.mulf %99, %96 : vector<64x640xf32>
    %101 = arith.select %98, %96, %100 : vector<64x640xi1>, vector<64x640xf32>
    %102 = arith.truncf %101 : vector<64x640xf32> to vector<64x640xbf16>
    %103 = arith.extf %102 : vector<64x640xbf16> to vector<64x640xf32>
    %104 = vector.broadcast %7 : vector<1x640xf32> to vector<64x640xf32>
    %105 = arith.mulf %103, %104 : vector<64x640xf32>
    %cst_43 = arith.constant dense<0.000000e+00> : vector<64xf32>
    %106 = vector.multi_reduction <add>, %105, %cst_43 [1] : vector<64x640xf32> to vector<64xf32>
    %107 = vector.shape_cast %106 : vector<64xf32> to vector<64x1xf32>
    %108 = arith.extf %102 : vector<64x640xbf16> to vector<64x640xf32>
    %109 = vector.broadcast %8 : vector<1x640xf32> to vector<64x640xf32>
    %110 = arith.mulf %108, %109 : vector<64x640xf32>
    %cst_44 = arith.constant dense<0.000000e+00> : vector<64xf32>
    %111 = vector.multi_reduction <add>, %110, %cst_44 [1] : vector<64x640xf32> to vector<64xf32>
    %112 = vector.shape_cast %111 : vector<64xf32> to vector<64x1xf32>
    %113 = tpu.iota {dimensions = array<i32: 1>} : vector<64x128xi32>
    %c0_i32 = arith.constant 0 : i32
    %114 = vector.broadcast %c0_i32 : i32 to vector<64x128xi32>
    %115 = arith.cmpi eq, %113, %114 : vector<64x128xi32>
    %c1_i32 = arith.constant 1 : i32
    %116 = vector.broadcast %c1_i32 : i32 to vector<64x128xi32>
    %117 = arith.cmpi eq, %113, %116 : vector<64x128xi32>
    %cst_45 = arith.constant 0.000000e+00 : f32
    %118 = vector.shape_cast %112 : vector<64x1xf32> to vector<64x1xf32>
    %119 = vector.broadcast %118 : vector<64x1xf32> to vector<64x128xf32>
    %120 = vector.broadcast %cst_45 : f32 to vector<64x128xf32>
    %121 = arith.select %117, %119, %120 : vector<64x128xi1>, vector<64x128xf32>
    %122 = vector.shape_cast %107 : vector<64x1xf32> to vector<64x1xf32>
    %123 = vector.broadcast %122 : vector<64x1xf32> to vector<64x128xf32>
    %124 = arith.select %115, %123, %121 : vector<64x128xi1>, vector<64x128xf32>
    %125 = vector.broadcast %6 : vector<1x128xf32> to vector<64x128xf32>
    %126 = arith.addf %124, %125 : vector<64x128xf32>
    %127 = arith.truncf %126 : vector<64x128xf32> to vector<64x128xbf16>
    %c0_46 = arith.constant 0 : index
    %c0_47 = arith.constant 0 : index
    %128 = vector.load %arg5[%c0_46, %c0_47] : memref<64x128xbf16, #tpu.memory_space<vmem>>, vector<64x128xbf16>
    tpu.vector_store %arg5[%c0_46, %c0_47], %127 {strides = array<i32>} : memref<64x128xbf16, #tpu.memory_space<vmem>>, vector<64x128xbf16>,
    return
  }
}

</mosaic_0001>

<bundles_post_ra>
// kernel: tpu_custom_call.1
= control target key start
LH: loop header
LB: loop body
LE: loop exit
PB: predicated region body
PF: predicated region fallthrough
CT: control target
= control target key end

     0   :  { %10 = vsyncpa [#allocation3], 0  ;;  %s3488_s0 = inlined_call_operand.hbm [shape: f32[64,128], index: 0, kind: input, shape index: {}]   ;;  %s3489_s1 = inlined_call_operand.hbm [shape: f32[128,128], index: 1, kind: input, shape index: {}]   ;;  %s3490_s2 = inlined_call_operand.hbm [shape: bf16[128,128], index: 2, kind: input, shape index: {}]   ;;  %s3491_s3 = inlined_call_operand.hbm [shape: bf16[128,640], index: 3, kind: input, shape index: {}]   ;;  %s3492_s4 = inlined_call_operand.hbm [shape: f32[16,640], index: 4, kind: input, shape index: {}]   ;;  %s3493_s5 = inlined_call_operand.hbm [shape: bf16[64,128], index: 5, kind: output, shape index: {}]  }
   0x1   :  { %11 = vsyncpa [#allocation6], 0 }
   0x2   :  { %12 = vsyncpa [#allocation9], 0 }
   0x3   :  { %13 = vsyncpa [#allocation4], 0  ;;  %s2450_s18 = smov [#allocation5]   ;;  %s2451_s20 = smov [#allocation8]  }
   0x4   :  { %s31_s19 = sshll.u32 %s2450_s18, 4  ;;  %s55_s21 = sshll.u32 %s2451_s20, 4  ;;  %s32_s19 = int_to_ptr.vmem [resolvable:$true] %s31_s19  ;;  %s2496_s21 = int_to_ptr.vmem [resolvable:$true] %s55_s21 }
   0x5   :  { %s2310_s24 = scalar_lea.hbm %s3489_s1, 2048 }
   0x6   :  { %p2311_p0 = scmp.ne.s32.totalorder %s3489_s1, %s2310_s24  ;;  %p2314_p1 = scmp.lt.u32.totalorder %s2310_s24, %s3489_s1 }
   0x8   :  { %p2316_p2 = pnand %p2314_p1, %p2311_p0 }
   0xa   :  { %2319 = shalt.err (!%p2316_p2)
}
   0xb   :  { %s2320_s29 = scalar_lea.vmem %s32_s19, 2048  ;;  %p2325_p4 = scmp.lt.s32.totalorder %s32_s19, %s32_s19 }
   0xc   :  { %p2321_p3 = scmp.ne.s32.totalorder %s32_s19, %s2320_s29  ;;  %p2326_p5 = scmp.lt.s32.totalorder %s2320_s29, %s2320_s29 }
   0xe   :  { %p2327_p6 = por %p2326_p5, %p2325_p4 }
  0x10   :  { %p2328_p7 = pnand %p2327_p6, %p2321_p3 }
  0x12   :  { %2331 = shalt.err (!%p2328_p7)
}
  0x13   :  { %s2452_s30 = smov 128   ;;  %s2453_s6 = smov 8  }
  0x14   :  { %37 = dma.hbm_to_vmem [thread:$0]  %s3489_s1, 2048, %s32_s19, [#allocation6], %s2452_s30, %s2452_s30, %s2453_s6  }
  0x15   :  { %s2332_s11 = scalar_lea.hbm %s3491_s3, 5120 }
  0x16   :  { %p2333_p8 = scmp.ne.s32.totalorder %s3491_s3, %s2332_s11  ;;  %p2336_p9 = scmp.lt.u32.totalorder %s2332_s11, %s3491_s3 }
  0x18   :  { %p2338_p10 = pnand %p2336_p9, %p2333_p8 }
  0x1a   :  { %2341 = shalt.err (!%p2338_p10)
}
  0x1b   :  { %s2342_s16 = scalar_lea.vmem %s2496_s21, 5120  ;;  %p2347_p12 = scmp.lt.s32.totalorder %s2496_s21, %s2496_s21 }
  0x1c   :  { %p2343_p11 = scmp.ne.s32.totalorder %s2496_s21, %s2342_s16  ;;  %p2348_p13 = scmp.lt.s32.totalorder %s2342_s16, %s2342_s16 }
  0x1e   :  { %p2349_p0 = por %p2348_p13, %p2347_p12 }
  0x20   :  { %p2350_p1 = pnand %p2349_p0, %p2343_p11 }
  0x22   :  { %2353 = shalt.err (!%p2350_p1)
}
  0x23   :  { %s2454_s1 = smov 320   ;;  %s2455_s17 = smov 20  }
  0x24   :  { %61 = dma.hbm_to_vmem [thread:$0]  %s3491_s3, 5120, %s2496_s21, [#allocation9], %s2454_s1, %s2454_s1, %s2455_s17  }
  0x25   :  { %s2456_s20 = smov [#allocation2]   ;;  %s2457_s23 = smov [#allocation7]  }
  0x26   :  { %s19_s22 = sshll.u32 %s2456_s20, 4  ;;  %s43_s24 = sshll.u32 %s2457_s23, 4  ;;  %s20_s22 = int_to_ptr.vmem [resolvable:$true] %s19_s22  ;;  %s2530_s24 = int_to_ptr.vmem [resolvable:$true] %s43_s24 }
  0x27   :  { %s2354_s27 = scalar_lea.hbm %s3488_s0, 1024 }
  0x28   :  { %p2355_p2 = scmp.ne.s32.totalorder %s3488_s0, %s2354_s27  ;;  %p2358_p3 = scmp.lt.u32.totalorder %s2354_s27, %s3488_s0 }
  0x2a   :  { %p2360_p4 = pnand %p2358_p3, %p2355_p2 }
  0x2c   :  { %2363 = shalt.err (!%p2360_p4)
}
  0x2d   :  { %s2364_s3 = scalar_lea.vmem %s20_s22, 1024  ;;  %p2369_p6 = scmp.lt.s32.totalorder %s20_s22, %s20_s22 }
  0x2e   :  { %p2365_p5 = scmp.ne.s32.totalorder %s20_s22, %s2364_s3  ;;  %p2370_p7 = scmp.lt.s32.totalorder %s2364_s3, %s2364_s3 }
  0x30   :  { %p2371_p8 = por %p2370_p7, %p2369_p6 }
  0x32   :  { %p2372_p9 = pnand %p2371_p8, %p2365_p5 }
  0x34   :  { %2375 = shalt.err (!%p2372_p9)
}
  0x35   :  { %25 = dma.hbm_to_vmem [thread:$0]  %s3488_s0, 1024, %s20_s22, [#allocation3], %s2452_s30, %s2452_s30, %s2453_s6  }
  0x36   :  { %s2376_s12 = scalar_lea.hbm %s3490_s2, 1024 }
  0x37   :  { %p2377_p10 = scmp.ne.s32.totalorder %s3490_s2, %s2376_s12  ;;  %p2380_p11 = scmp.lt.u32.totalorder %s2376_s12, %s3490_s2 }
  0x39   :  { %p2382_p12 = pnand %p2380_p11, %p2377_p10 }
  0x3b   :  { %2385 = shalt.err (!%p2382_p12)
}
  0x3c   :  { %s2386_s1 = scalar_lea.vmem %s2530_s24, 1024  ;;  %p2391_p0 = scmp.lt.s32.totalorder %s2530_s24, %s2530_s24 }
  0x3d   :  { %p2387_p13 = scmp.ne.s32.totalorder %s2530_s24, %s2386_s1  ;;  %p2392_p1 = scmp.lt.s32.totalorder %s2386_s1, %s2386_s1 }
  0x3f   :  { %p2393_p2 = por %p2392_p1, %p2391_p0 }
  0x41   :  { %p2394_p3 = pnand %p2393_p2, %p2387_p13 }
  0x43   :  { %2397 = shalt.err (!%p2394_p3)
}
  0x44   :  { %s2458_s0 = smov 64   ;;  %s2459_s30 = smov 4  }
  0x45   :  { %49 = dma.hbm_to_vmem [thread:$0]  %s3490_s2, 1024, %s2530_s24, [#allocation6], %s2458_s0, %s2458_s0, %s2459_s30  }
  0x46   :  { %s2460_s18 = smov [#allocation10]   ;;  %s2398_s23 = scalar_lea.hbm %s3492_s4, 1280 }
  0x47   :  { %s67_s19 = sshll.u32 %s2460_s18, 4  ;;  %p2399_p4 = scmp.ne.s32.totalorder %s3492_s4, %s2398_s23  ;;  %s68_s19 = int_to_ptr.vmem [resolvable:$true] %s67_s19 }
  0x48   :  { %p2402_p5 = scmp.lt.u32.totalorder %s2398_s23, %s3492_s4 }
  0x4a   :  { %p2404_p6 = pnand %p2402_p5, %p2399_p4 }
  0x4c   :  { %2407 = shalt.err (!%p2404_p6)
}
  0x4d   :  { %s2408_s29 = scalar_lea.vmem %s68_s19, 1280  ;;  %p2413_p8 = scmp.lt.s32.totalorder %s68_s19, %s68_s19 }
  0x4e   :  { %p2409_p7 = scmp.ne.s32.totalorder %s68_s19, %s2408_s29  ;;  %p2414_p9 = scmp.lt.s32.totalorder %s2408_s29, %s2408_s29 }
  0x50   :  { %p2415_p10 = por %p2414_p9, %p2413_p8 }
  0x52   :  { %p2416_p11 = pnand %p2415_p10, %p2409_p7 }
  0x54   :  { %2419 = shalt.err (!%p2416_p11)
}
  0x55   :  { %s2461_s2 = smov 640   ;;  %s2462_s24 = smov 40  }
  0x56   :  { %73 = dma.hbm_to_vmem [thread:$0]  %s3492_s4, 1280, %s68_s19, [#allocation9], %s2461_s2, %s2461_s2, %s2462_s24  }
  0x57   :  { %2442 = dma.done.wait [#allocation3], 1024  }
  0x58   :  { %2443 = vsyncadd [#allocation3], 4294966272 }
  0x59   :  { %2444 = dma.done.wait [#allocation6], 3072  }
  0x5a   :  { %2445 = vsyncadd [#allocation6], 4294964224 }
  0x5b   :  { %2446 = dma.done.wait [#allocation9], 6400  }
  0x5c   :  { %2447 = vsyncadd [#allocation9], 4294960896  ;;  %v119_v0 = vld [vmem:[#allocation5] sm:$0xff]  ;;  %v120_v1 = vld [vmem:[#allocation5 + $0x8] sm:$0xff]  ;;  %s2465_s4 = smov [#allocation11]  }
  0x5d   :  { %v121_v2 = vld [vmem:[#allocation5 + $0x10] sm:$0xff]  ;;  %v2168_v3 = vpack.c.bf16 %v120_v1, %v119_v0  ;;  %v122_v4 = vld [vmem:[#allocation5 + $0x18] sm:$0xff]  ;;  %v123_v6 = vld [vmem:[#allocation5 + $0x20] sm:$0xff]  ;;  %s1927_s3 = sshll.u32 %s2465_s4, 4  ;;  %s1928_s3 = int_to_ptr.vmem [resolvable:$true] %s1927_s3 }
  0x5e   :  { %v2172_v5 = vpack.c.bf16 %v122_v4, %v121_v2  ;;  %v124_v7 = vld [vmem:[#allocation5 + $0x28] sm:$0xff]  ;;  %v111_v9 = vld [vmem:[#allocation2] sm:$0xff]  ;;  %v125_v10 = vld [vmem:[#allocation5 + $0x30] sm:$0xff]  ;;  %s2420_s21 = scalar_lea.vmem %s1928_s3, 512  ;;  %p2425_p13 = scmp.lt.s32.totalorder %s1928_s3, %s1928_s3 }
  0x5f   :  { %2169 = vmatprep.subr.bf16.mxu0 %v2168_v3  ;;  %v2176_v8 = vpack.c.bf16 %v124_v7, %v123_v6  ;;  %v126_v11 = vld [vmem:[#allocation5 + $0x38] sm:$0xff]  ;;  %2108 = vmatprep.mubr.f32.mxu0 %v111_v9  ;;  %v127_v12 = vld [vmem:[#allocation5 + $0x40] sm:$0xff]  ;;  %v128_v13 = vld [vmem:[#allocation5 + $0x48] sm:$0xff]  ;;  %p2421_p12 = scmp.ne.s32.totalorder %s1928_s3, %s2420_s21  ;;  %p2426_p0 = scmp.lt.s32.totalorder %s2420_s21, %s2420_s21 }
  0x60   :  { %2171 = vmatpush3.bf16.msra.mxu0 %v2168_v3  ;;  %v2180_v14 = vpack.c.bf16 %v126_v11, %v125_v10  ;;  %v129_v15 = vld [vmem:[#allocation5 + $0x50] sm:$0xff]  ;;  %v130_v16 = vld [vmem:[#allocation5 + $0x58] sm:$0xff]  ;;  %v2184_v17 = vpack.c.bf16 %v128_v13, %v127_v12  ;;  %v131_v18 = vld [vmem:[#allocation5 + $0x60] sm:$0xff] }
  0x61   :  { %2173 = vmatprep.subr.bf16.mxu0 %v2172_v5  ;;  %v132_v19 = vld [vmem:[#allocation5 + $0x68] sm:$0xff]  ;;  %v2188_v20 = vpack.c.bf16 %v130_v16, %v129_v15  ;;  %v133_v21 = vld [vmem:[#allocation5 + $0x70] sm:$0xff]  ;;  %v134_v22 = vld [vmem:[#allocation5 + $0x78] sm:$0xff]  ;;  %p2427_p1 = por %p2426_p0, %p2425_p13 }
  0x62   :  { %v2192_v23 = vpack.c.bf16 %v132_v19, %v131_v18  ;;  %v2196_v24 = vpack.c.bf16 %v134_v22, %v133_v21  ;;  %v112_v25 = vld [vmem:[#allocation2 + $0x8] sm:$0xff]  ;;  %v113_v26 = vld [vmem:[#allocation2 + $0x10] sm:$0xff]  ;;  %v114_v27 = vld [vmem:[#allocation2 + $0x18] sm:$0xff] }
  0x63   :  { %v115_v28 = vld [vmem:[#allocation2 + $0x20] sm:$0xff]  ;;  %v116_v29 = vld [vmem:[#allocation2 + $0x28] sm:$0xff]  ;;  %v117_v30 = vld [vmem:[#allocation2 + $0x30] sm:$0xff]  ;;  %p2428_p2 = pnand %p2427_p1, %p2421_p12 }
  0x64   :  { %2175 = vmatpush3.bf16.msra.mxu0 %v2172_v5  ;;  %v118_v31 = vld [vmem:[#allocation2 + $0x38] sm:$0xff]  ;;  %v2232_v32 = vld [vmem:[#allocation7] sm:$0xff]   ;;  %v2233_v33 = vld [vmem:[#allocation7 + $0x8] sm:$0xff]  }
  0x65   :  { %2177 = vmatprep.subr.bf16.mxu0 %v2176_v8  ;;  %2120 = vmatprep.subr.bf16.mxu1 %v2232_v32  ;;  %v2234_v34 = vld [vmem:[#allocation7 + $0x10] sm:$0xff]   ;;  %v2235_v35 = vld [vmem:[#allocation7 + $0x18] sm:$0xff]   ;;  %v2236_v36 = vld [vmem:[#allocation7 + $0x20] sm:$0xff]  }
  0x66   :  { %2121 = vmatpush3.bf16.msra.mxu1 %v2232_v32  ;;  %v2237_v37 = vld [vmem:[#allocation7 + $0x28] sm:$0xff]   ;;  %v2238_v38 = vld [vmem:[#allocation7 + $0x30] sm:$0xff]   ;;  %v2239_v39 = vld [vmem:[#allocation7 + $0x38] sm:$0xff]  }
  0x67   :  { %2122 = vmatprep.subr.bf16.mxu1 %v2233_v33 }
  0x68   :  { %2179 = vmatpush3.bf16.msra.mxu0 %v2176_v8 }
  0x69   :  { %2181 = vmatprep.subr.bf16.mxu0 %v2180_v14 }
  0x6a   :  { %2123 = vmatpush3.bf16.msra.mxu1 %v2233_v33 }
  0x6b   :  { %2124 = vmatprep.subr.bf16.mxu1 %v2234_v34 }
  0x6c   :  { %2183 = vmatpush3.bf16.msra.mxu0 %v2180_v14 }
  0x6d   :  { %2185 = vmatprep.subr.bf16.mxu0 %v2184_v17 }
  0x6e   :  { %2125 = vmatpush3.bf16.msra.mxu1 %v2234_v34 }
  0x6f   :  { %2126 = vmatprep.subr.bf16.mxu1 %v2235_v35 }
  0x70   :  { %2187 = vmatpush3.bf16.msra.mxu0 %v2184_v17 }
  0x71   :  { %2189 = vmatprep.subr.bf16.mxu0 %v2188_v20 }
  0x72   :  { %2127 = vmatpush3.bf16.msra.mxu1 %v2235_v35 }
  0x73   :  { %2128 = vmatprep.subr.bf16.mxu1 %v2236_v36 }
  0x74   :  { %2191 = vmatpush3.bf16.msra.mxu0 %v2188_v20 }
  0x75   :  { %2193 = vmatprep.subr.bf16.mxu0 %v2192_v23 }
  0x76   :  { %2129 = vmatpush3.bf16.msra.mxu1 %v2236_v36 }
  0x77   :  { %2130 = vmatprep.subr.bf16.mxu1 %v2237_v37 }
  0x78   :  { %2195 = vmatpush3.bf16.msra.mxu0 %v2192_v23 }
  0x79   :  { %2197 = vmatprep.subr.bf16.mxu0 %v2196_v24 }
  0x7a   :  { %2131 = vmatpush3.bf16.msra.mxu1 %v2237_v37 }
  0x7b   :  { %2132 = vmatprep.subr.bf16.mxu1 %v2238_v38 }
  0x7c   :  { %2199 = vmatpush3.bf16.msra.mxu0 %v2196_v24  ;;  %v90_v24 = vld [vmem:[#allocation10] ss:$0 sm:$0xff] }
  0x7e   :  { %2133 = vmatpush3.bf16.msra.mxu1 %v2238_v38 }
  0x7f   :  { %2109 = vmatmul.mubr.f32.vlgmr.msra.gmra.mrb[0].mxu0 %v112_v25  ;;  %2134 = vmatprep.subr.bf16.mxu1 %v2239_v39 }
  0x80   :  { %2111 = vmatprep.mubr.f32.mxu0 %v113_v26 }
  0x82   :  { %2135 = vmatpush3.bf16.msra.mxu1 %v2239_v39 }
  0x83   :  { %2112 = vmatmul.mubr.f32.gmra.mrb[2].mxu0 %v114_v27  ;;  %v91_v27 = vld [vmem:[#allocation10 + $0x1] ss:$0 sm:$0xff] }
  0x84   :  { %2114 = vmatprep.mubr.f32.mxu0 %v115_v28 }
  0x87   :  { %2115 = vmatmul.mubr.f32.gmra.mrb[4].mxu0 %v116_v29 }
  0x88   :  { %2117 = vmatprep.mubr.f32.mxu0 %v117_v30 }
  0x8b   :  { %2118 = vmatmul.mubr.f32.gmra.mrb[6].mxu0 %v118_v31 }
 0x152   :  { %v2110_v40 = vpop.f32.mrb[0].mxu0 }
 0x153   :  { %v255_v41 = vmul.f32 %v2110_v40, %v2110_v40  ;;  %v201_v42 = vpop.f32.mrb[1].mxu0 }
 0x154   :  { %v240_v43 = vadd.f32 %v2110_v40, %v201_v42  ;;  %v254_v44 = vmul.f32 %v201_v42, %v201_v42 }
 0x156   :  { %v262_v45 = vadd.f32 %v255_v41, %v254_v44  ;;  %v2113_v46 = vpop.f32.mrb[2].mxu0 }
 0x157   :  { %v211_v47 = vpop.f32.mrb[3].mxu0  ;;  %v257_v50 = vmul.f32 %v2113_v46, %v2113_v46 }
 0x158   :  { %v241_v48 = vadd.f32 %v240_v43, %v211_v47  ;;  %v256_v49 = vmul.f32 %v211_v47, %v211_v47 }
 0x15a   :  { %v263_v51 = vadd.f32 %v262_v45, %v256_v49  ;;  %v2116_v52 = vpop.f32.mrb[4].mxu0  ;;  %v242_v53 = vadd.f32 %v2113_v46, %v241_v48 }
 0x15b   :  { %v221_v54 = vpop.f32.mrb[5].mxu0  ;;  %v259_v58 = vmul.f32 %v2116_v52, %v2116_v52 }
 0x15c   :  { %v243_v55 = vadd.f32 %v242_v53, %v221_v54  ;;  %v258_v56 = vmul.f32 %v221_v54, %v221_v54  ;;  %v264_v57 = vadd.f32 %v263_v51, %v257_v50 }
 0x15e   :  { %v265_v59 = vadd.f32 %v264_v57, %v258_v56  ;;  %v2119_v60 = vpop.f32.mrb[6].mxu0  ;;  %v244_v61 = vadd.f32 %v2116_v52, %v243_v55 }
 0x15f   :  { %v231_v62 = vpop.f32.mrb[7].mxu0  ;;  %v261_v2 = vmul.f32 %v2119_v60, %v2119_v60 }
 0x160   :  { %v245_v63 = vadd.f32 %v244_v61, %v231_v62  ;;  %v260_v0 = vmul.f32 %v231_v62, %v231_v62  ;;  %v266_v1 = vadd.f32 %v265_v59, %v259_v58 }
 0x162   :  { %v246_v3 = vadd.f32 %v2119_v60, %v245_v63  ;;  %v267_v4 = vadd.f32 %v266_v1, %v260_v0 }
 0x164   :  { %v247_v5 = vrot.slane %v246_v3, 4  ;;  %v268_v6 = vadd.f32 %v267_v4, %v261_v2  ;;  %v2242_v2 = vld [vmem:[#allocation8 + $0x4] ss:$20 sps:$4 sm:$0xff]   ;;  %v2240_v4 = vld [vmem:[#allocation8] ss:$20 sps:$4 sm:$0xff]  }
 0x165   :  { %801 = vmatprep.subr.bf16.mxu0 %v2242_v2 }
 0x166   :  { %v248_v7 = vadd.f32 %v247_v5, %v246_v3  ;;  %v269_v8 = vrot.slane %v268_v6, 4  ;;  %v2245_v3 = vld [vmem:[#allocation8 + $0xc] ss:$20 sps:$4 sm:$0xff]   ;;  %v2243_v5 = vld [vmem:[#allocation8 + $0x8] ss:$20 sps:$4 sm:$0xff]   ;;  %802 = vmatpush1.bf16.msra.mxu0 %v2240_v4 }
 0x167   :  { %874 = vmatprep.subr.bf16.mxu1 %v2245_v3 }
 0x168   :  { %v249_v9 = vrot.slane %v248_v7, 2  ;;  %v270_v10 = vadd.f32 %v269_v8, %v268_v6  ;;  %v2248_v6 = vld [vmem:[#allocation8 + $0x2c] ss:$20 sps:$4 sm:$0xff]   ;;  %v2246_v8 = vld [vmem:[#allocation8 + $0x28] ss:$20 sps:$4 sm:$0xff]  }
 0x169   :  { %803 = vmatprep.subr.bf16.mxu0 %v2248_v6 }
 0x16a   :  { %v250_v11 = vadd.f32 %v249_v9, %v248_v7  ;;  %v271_v12 = vrot.slane %v270_v10, 2  ;;  %v2251_v7 = vld [vmem:[#allocation8 + $0x34] ss:$20 sps:$4 sm:$0xff]   ;;  %v2249_v9 = vld [vmem:[#allocation8 + $0x30] ss:$20 sps:$4 sm:$0xff]   ;;  %804 = vmatpush1.bf16.msra.mxu0 %v2246_v8 }
 0x16c   :  { %v251_v13 = vrot.slane %v250_v11, 1  ;;  %v272_v14 = vadd.f32 %v271_v12, %v270_v10  ;;  %v2254_v10 = vld [vmem:[#allocation8 + $0x54] ss:$20 sps:$4 sm:$0xff]   ;;  %v2252_v12 = vld [vmem:[#allocation8 + $0x50] ss:$20 sps:$4 sm:$0xff]  }
 0x16d   :  { %805 = vmatprep.subr.bf16.mxu0 %v2254_v10 }
 0x16e   :  { %v252_v15 = vadd.f32 %v251_v13, %v250_v11  ;;  %v273_v16 = vrot.slane %v272_v14, 1  ;;  %v2257_v11 = vld [vmem:[#allocation8 + $0x5c] ss:$20 sps:$4 sm:$0xff]   ;;  %v2255_v13 = vld [vmem:[#allocation8 + $0x58] ss:$20 sps:$4 sm:$0xff]   ;;  %806 = vmatpush1.bf16.msra.mxu0 %v2252_v12 }
 0x170   :  { %v253_v17 = vmul.f32 0.015625, %v252_v15  ;;  %v274_v18 = vadd.f32 %v273_v16, %v272_v14  ;;  %v2260_v14 = vld [vmem:[#allocation8 + $0x7c] ss:$20 sps:$4 sm:$0xff]   ;;  %v2263_v15 = vld [vmem:[#allocation8 + $0x84] ss:$20 sps:$4 sm:$0xff]  }
 0x171   :  { %v2258_v16 = vld [vmem:[#allocation8 + $0x78] ss:$20 sps:$4 sm:$0xff]   ;;  %807 = vmatprep.subr.bf16.mxu0 %v2260_v14 }
 0x172   :  { %v275_v19 = vmul.f32 0.015625, %v274_v18  ;;  %v276_v20 = vmul.f32 %v253_v17, %v253_v17  ;;  %808 = vmatpush1.bf16.msra.mxu0 %v2258_v16  ;;  %v2266_v18 = vld [vmem:[#allocation8 + $0xa4] ss:$20 sps:$4 sm:$0xff]  }
 0x173   :  { %809 = vmatprep.subr.bf16.mxu0 %v2266_v18 }
 0x174   :  { %v277_v21 = vsub.f32 %v275_v19, %v276_v20  ;;  %v2269_v19 = vld [vmem:[#allocation8 + $0xac] ss:$20 sps:$4 sm:$0xff]  }
 0x175   :  { %v2264_v20 = vld [vmem:[#allocation8 + $0xa0] ss:$20 sps:$4 sm:$0xff]  }
 0x176   :  { %v278_v22 = vmax.f32 %v277_v21, 0.0  ;;  %v2267_v21 = vld [vmem:[#allocation8 + $0xa8] ss:$20 sps:$4 sm:$0xff]   ;;  %810 = vmatpush1.bf16.msra.mxu0 %v2264_v20  ;;  %v92_v20 = vld [vmem:[#allocation10 + $0x2] ss:$0 sm:$0xff] }
 0x178   :  { %v279_v23 = vadd.f32 1e-05, %v278_v22  ;;  %v2272_v22 = vld [vmem:[#allocation8 + $0xcc] ss:$20 sps:$4 sm:$0xff]  }
 0x179   :  { %811 = vmatprep.subr.bf16.mxu0 %v2272_v22 }
 0x17a   :  { %2296 = vrsqrt.f32 %v279_v23  ;;  %v2275_v23 = vld [vmem:[#allocation8 + $0xd4] ss:$20 sps:$4 sm:$0xff]  }
 0x184   :  { %v2297_v25 = vpop.eup %2296 }
 0x185   :  { %v281_v26 = vmul.f32 %v2297_v25, %v90_v24  ;;  %v2270_v24 = vld [vmem:[#allocation8 + $0xc8] ss:$20 sps:$4 sm:$0xff]   ;;  %v2273_v25 = vld [vmem:[#allocation8 + $0xd0] ss:$20 sps:$4 sm:$0xff]  }
 0x186   :  { %812 = vmatpush1.bf16.msra.mxu0 %v2270_v24 }
 0x187   :  { %v282_v28 = vmul.f32 %v281_v26, %v253_v17  ;;  %v290_v29 = vmul.f32 %v281_v26, %v231_v62  ;;  %v284_v30 = vmul.f32 %v281_v26, %v201_v42  ;;  %v285_v31 = vmul.f32 %v2110_v40, %v281_v26  ;;  %v2261_v17 = vld [vmem:[#allocation8 + $0x80] ss:$20 sps:$4 sm:$0xff]  }
 0x188   :  { %v286_v32 = vmul.f32 %v281_v26, %v211_v47  ;;  %v287_v33 = vmul.f32 %v2113_v46, %v281_v26  ;;  %v288_v34 = vmul.f32 %v281_v26, %v221_v54  ;;  %v289_v35 = vmul.f32 %v2116_v52, %v281_v26 }
 0x189   :  { %v283_v36 = vsub.f32 %v91_v27, %v282_v28  ;;  %v291_v37 = vmul.f32 %v2119_v60, %v281_v26  ;;  %v2278_v26 = vld [vmem:[#allocation8 + $0xf4] ss:$20 sps:$4 sm:$0xff]   ;;  %v2276_v27 = vld [vmem:[#allocation8 + $0xf0] ss:$20 sps:$4 sm:$0xff]   ;;  %v2279_v28 = vld [vmem:[#allocation8 + $0xf8] ss:$20 sps:$4 sm:$0xff]  }
 0x18a   :  { %813 = vmatprep.subr.bf16.mxu0 %v2278_v26 }
 0x18b   :  { %v298_v38 = vadd.f32 %v290_v29, %v283_v36  ;;  %v292_v39 = vadd.f32 %v284_v30, %v283_v36  ;;  %v293_v41 = vadd.f32 %v285_v31, %v283_v36  ;;  %v294_v43 = vadd.f32 %v286_v32, %v283_v36  ;;  %v2281_v29 = vld [vmem:[#allocation8 + $0xfc] ss:$20 sps:$4 sm:$0xff]   ;;  %v2287_v31 = vld [vmem:[#allocation8 + $0x124] ss:$20 sps:$4 sm:$0xff]   ;;  %814 = vmatpush1.bf16.msra.mxu0 %v2276_v27 }
 0x18c   :  { %v295_v44 = vadd.f32 %v287_v33, %v283_v36  ;;  %v296_v45 = vadd.f32 %v288_v34, %v283_v36  ;;  %v297_v48 = vadd.f32 %v289_v35, %v283_v36  ;;  %v299_v49 = vadd.f32 %v291_v37, %v283_v36  ;;  %v2284_v30 = vld [vmem:[#allocation8 + $0x11c] ss:$20 sps:$4 sm:$0xff]   ;;  %v2282_v33 = vld [vmem:[#allocation8 + $0x118] ss:$20 sps:$4 sm:$0xff]   ;;  %v2285_v34 = vld [vmem:[#allocation8 + $0x120] ss:$20 sps:$4 sm:$0xff]  }
 0x18d   :  { %vm300_vm0 = vcmp.ge.f32.partialorder %v292_v39, 0.0  ;;  %vm301_vm1 = vcmp.ge.f32.partialorder %v293_v41, 0.0  ;;  %v308_v50 = vmul.f32 0.17, %v292_v39  ;;  %v309_v51 = vmul.f32 0.17, %v293_v41  ;;  %815 = vmatprep.subr.bf16.mxu0 %v2284_v30 }
 0x18e   :  { %vm302_vm2 = vcmp.ge.f32.partialorder %v294_v43, 0.0  ;;  %vm303_vm3 = vcmp.ge.f32.partialorder %v295_v44, 0.0  ;;  %v310_v40 = vmul.f32 0.17, %v294_v43  ;;  %v311_v42 = vmul.f32 0.17, %v295_v44 }
 0x18f   :  { %v316_v46 = vsel %vm300_vm0, %v292_v39, %v308_v50  ;;  %v317_v47 = vsel %vm301_vm1, %v293_v41, %v309_v51  ;;  %vm304_vm4 = vcmp.ge.f32.partialorder %v296_v45, 0.0  ;;  %vm305_vm5 = vcmp.ge.f32.partialorder %v297_v48, 0.0  ;;  %v2581_v35 = vld [vmem:[#allocation8 + $0x10] ss:$20 sps:$4 sm:$0xff]   ;;  %816 = vmatpush1.bf16.msra.mxu0 %v2282_v33 }
 0x190   :  { %v324_v52 = vpack.c.bf16 %v317_v47, %v316_v46  ;;  %v318_v53 = vsel %vm302_vm2, %v294_v43, %v310_v40  ;;  %v319_v54 = vsel %vm303_vm3, %v295_v44, %v311_v42  ;;  %v312_v55 = vmul.f32 0.17, %v296_v45  ;;  %2144 = vmatprep.subr.bf16.mxu0 %v2581_v35 }
 0x191   :  { %v325_v56 = vpack.c.bf16 %v319_v54, %v318_v53  ;;  %v313_v57 = vmul.f32 0.17, %v297_v48  ;;  %vm306_vm6 = vcmp.ge.f32.partialorder %v298_v38, 0.0  ;;  %vm307_vm7 = vcmp.ge.f32.partialorder %v299_v49, 0.0 }
 0x192   :  { %2136 = vmatprep.mubr.bf16.mxu1 %v324_v52  ;;  %v320_v58 = vsel %vm304_vm4, %v296_v45, %v312_v55  ;;  %v314_v59 = vmul.f32 0.17, %v298_v38  ;;  %v315_v60 = vmul.f32 0.17, %v299_v49  ;;  %v2463_v32 = vmov 0  }
 0x193   :  { %2137 = vmatmul.mubr.bf16.vlgmr.msra.gmra.mrb[0].mxu1 %v325_v56  ;;  %v321_v61 = vsel %vm305_vm5, %v297_v48, %v313_v57  ;;  %833 = vmatprep.mubr.bf16.mxu0 %v2463_v32 }
 0x194   :  { %v326_v62 = vpack.c.bf16 %v321_v61, %v320_v58  ;;  %v322_v63 = vsel %vm306_vm6, %v298_v38, %v314_v59  ;;  %v323_v0 = vsel %vm307_vm7, %v299_v49, %v315_v60  ;;  %875 = vmatpush1.bf16.msra.mxu1 %v2243_v5 }
 0x195   :  { %v327_v1 = vpack.c.bf16 %v323_v0, %v322_v63  ;;  %876 = vmatprep.subr.bf16.mxu1 %v2251_v7 }
 0x196   :  { %2140 = vmatprep.mubr.bf16.mxu1 %v326_v62 }
 0x198   :  { %877 = vmatpush1.bf16.msra.mxu1 %v2249_v9 }
 0x199   :  { %878 = vmatprep.subr.bf16.mxu1 %v2257_v11 }
 0x19b   :  { %2141 = vmatmul.mubr.bf16.gmra.mrb[4].mxu1 %v327_v1 }
 0x19c   :  { %879 = vmatpush1.bf16.msra.mxu1 %v2255_v13  ;;  %906 = vmatprep.mubr.bf16.mxu1 %v2463_v32 }
 0x19d   :  { %880 = vmatprep.subr.bf16.mxu1 %v2263_v15 }
 0x1a0   :  { %881 = vmatpush1.bf16.msra.mxu1 %v2261_v17 }
 0x1a1   :  { %882 = vmatprep.subr.bf16.mxu1 %v2269_v19 }
 0x1a4   :  { %883 = vmatpush1.bf16.msra.mxu1 %v2267_v21 }
 0x1a5   :  { %884 = vmatprep.subr.bf16.mxu1 %v2275_v23  ;;  %v93_v23 = vld [vmem:[#allocation10 + $0x3] ss:$0 sm:$0xff] }
 0x1a8   :  { %885 = vmatpush1.bf16.msra.mxu1 %v2273_v25 }
 0x1a9   :  { %886 = vmatprep.subr.bf16.mxu1 %v2281_v29 }
 0x1ac   :  { %887 = vmatpush1.bf16.msra.mxu1 %v2279_v28 }
 0x1ad   :  { %888 = vmatprep.subr.bf16.mxu1 %v2287_v31 }
 0x1b0   :  { %889 = vmatpush1.bf16.msra.mxu1 %v2285_v34 }
 0x1b1   :  { %2200 = vmatprep.subr.bf16.mxu1 %v2581_v35 }
 0x266   :  { %v2138_v36 = vpop.f32.mrb[0].mxu1 }
 0x267   :  { %v426_v37 = vpop.f32.mrb[1].mxu1  ;;  %v473_v45 = vmul.f32 %v2138_v36, %v2138_v36 }
 0x268   :  { %v2139_v38 = vpop.f32.mrb[2].mxu1  ;;  %v471_v41 = vmul.f32 %v426_v37, %v426_v37 }
 0x269   :  { %v429_v39 = vpop.f32.mrb[3].mxu1  ;;  %v474_v50 = vmul.f32 %v2139_v38, %v2139_v38 }
 0x26a   :  { %v457_v43 = vadd.f32 %v429_v39, %v426_v37  ;;  %v472_v44 = vmul.f32 %v429_v39, %v429_v39 }
 0x26c   :  { %v458_v48 = vadd.f32 %v2138_v36, %v457_v43  ;;  %v479_v49 = vadd.f32 %v472_v44, %v471_v41 }
 0x26e   :  { %v480_v51 = vadd.f32 %v479_v49, %v473_v45  ;;  %v2142_v40 = vpop.f32.mrb[4].mxu1  ;;  %v459_v42 = vadd.f32 %v2139_v38, %v458_v48 }
 0x26f   :  { %v442_v46 = vpop.f32.mrb[5].mxu1  ;;  %v477_v59 = vmul.f32 %v2142_v40, %v2142_v40 }
 0x270   :  { %v460_v47 = vadd.f32 %v459_v42, %v442_v46  ;;  %v475_v52 = vmul.f32 %v442_v46, %v442_v46  ;;  %v481_v53 = vadd.f32 %v480_v51, %v474_v50  ;;  %v2143_v54 = vpop.f32.mrb[6].mxu1 }
 0x271   :  { %v445_v55 = vpop.f32.mrb[7].mxu1  ;;  %v478_v62 = vmul.f32 %v2143_v54, %v2143_v54 }
 0x272   :  { %v482_v56 = vadd.f32 %v481_v53, %v475_v52  ;;  %v461_v57 = vadd.f32 %v460_v47, %v445_v55  ;;  %v476_v58 = vmul.f32 %v445_v55, %v445_v55 }
 0x274   :  { %v462_v60 = vadd.f32 %v2142_v40, %v461_v57  ;;  %v483_v61 = vadd.f32 %v482_v56, %v476_v58 }
 0x276   :  { %v463_v63 = vadd.f32 %v2143_v54, %v462_v60  ;;  %v484_v0 = vadd.f32 %v483_v61, %v477_v59  ;;  %v2290_v61 = vld [vmem:[#allocation8 + $0x60] ss:$20 sps:$4 sm:$0xff]  }
 0x278   :  { %v464_v1 = vrot.slane %v463_v63, 4  ;;  %v485_v2 = vadd.f32 %v484_v0, %v478_v62 }
 0x27a   :  { %v465_v3 = vadd.f32 %v464_v1, %v463_v63  ;;  %v486_v4 = vrot.slane %v485_v2, 4 }
 0x27c   :  { %v466_v5 = vrot.slane %v465_v3, 2  ;;  %v487_v6 = vadd.f32 %v486_v4, %v485_v2  ;;  %v2291_v2 = vld [vmem:[#allocation8 + $0x88] ss:$20 sps:$4 sm:$0xff]   ;;  %v2294_v4 = vld [vmem:[#allocation8 + $0x100] ss:$20 sps:$4 sm:$0xff]  }
 0x27e   :  { %v467_v7 = vadd.f32 %v466_v5, %v465_v3  ;;  %v488_v8 = vrot.slane %v487_v6, 2  ;;  %v2293_v3 = vld [vmem:[#allocation8 + $0xd8] ss:$20 sps:$4 sm:$0xff]   ;;  %v2295_v5 = vld [vmem:[#allocation8 + $0x128] ss:$20 sps:$4 sm:$0xff]  }
 0x280   :  { %v468_v9 = vrot.slane %v467_v7, 1  ;;  %v489_v10 = vadd.f32 %v488_v8, %v487_v6 }
 0x282   :  { %v469_v11 = vadd.f32 %v468_v9, %v467_v7  ;;  %v490_v12 = vrot.slane %v489_v10, 1 }
 0x284   :  { %v470_v13 = vmul.f32 0.015625, %v469_v11  ;;  %v491_v14 = vadd.f32 %v490_v12, %v489_v10 }
 0x286   :  { %v492_v15 = vmul.f32 0.015625, %v491_v14  ;;  %v493_v16 = vmul.f32 %v470_v13, %v470_v13 }
 0x288   :  { %v494_v17 = vsub.f32 %v492_v15, %v493_v16 }
 0x28a   :  { %v495_v18 = vmax.f32 %v494_v17, 0.0 }
 0x28c   :  { %v496_v19 = vadd.f32 1e-05, %v495_v18 }
 0x28e   :  { %2298 = vrsqrt.f32 %v496_v19 }
 0x298   :  { %v2299_v21 = vpop.eup %2298 }
 0x299   :  { %v498_v22 = vmul.f32 %v2299_v21, %v92_v20 }
 0x29b   :  { %v499_v24 = vmul.f32 %v498_v22, %v470_v13  ;;  %v506_v25 = vmul.f32 %v498_v22, %v445_v55  ;;  %v501_v26 = vmul.f32 %v498_v22, %v426_v37  ;;  %v502_v27 = vmul.f32 %v498_v22, %v429_v39 }
 0x29c   :  { %v503_v28 = vmul.f32 %v2138_v36, %v498_v22  ;;  %v504_v29 = vmul.f32 %v2139_v38, %v498_v22  ;;  %v505_v30 = vmul.f32 %v498_v22, %v442_v46  ;;  %v507_v31 = vmul.f32 %v2142_v40, %v498_v22  ;;  %v2289_v46 = vld [vmem:[#allocation8 + $0x38] ss:$20 sps:$4 sm:$0xff]  }
 0x29d   :  { %v500_v33 = vsub.f32 %v93_v23, %v499_v24  ;;  %v508_v34 = vmul.f32 %v2143_v54, %v498_v22 }
 0x29f   :  { %v514_v41 = vadd.f32 %v506_v25, %v500_v33  ;;  %v509_v43 = vadd.f32 %v501_v26, %v500_v33  ;;  %v510_v44 = vadd.f32 %v502_v27, %v500_v33  ;;  %v511_v45 = vadd.f32 %v503_v28, %v500_v33 }
 0x2a0   :  { %v512_v48 = vadd.f32 %v504_v29, %v500_v33  ;;  %v513_v49 = vadd.f32 %v505_v30, %v500_v33  ;;  %v515_v50 = vadd.f32 %v507_v31, %v500_v33  ;;  %v516_v51 = vadd.f32 %v508_v34, %v500_v33 }
 0x2a1   :  { %vm517_vm8 = vcmp.ge.f32.partialorder %v509_v43, 0.0  ;;  %vm518_vm9 = vcmp.ge.f32.partialorder %v510_v44, 0.0  ;;  %v525_v42 = vmul.f32 0.17, %v509_v43  ;;  %v526_v47 = vmul.f32 0.17, %v510_v44 }
 0x2a2   :  { %vm519_vm10 = vcmp.ge.f32.partialorder %v511_v45, 0.0  ;;  %vm520_vm11 = vcmp.ge.f32.partialorder %v512_v48, 0.0  ;;  %v527_v36 = vmul.f32 0.17, %v511_v45  ;;  %v528_v37 = vmul.f32 0.17, %v512_v48 }
 0x2a3   :  { %v533_v38 = vsel %vm517_vm8, %v509_v43, %v525_v42  ;;  %v534_v39 = vsel %vm518_vm9, %v510_v44, %v526_v47  ;;  %vm521_vm12 = vcmp.ge.f32.partialorder %v513_v49, 0.0  ;;  %vm522_vm13 = vcmp.ge.f32.partialorder %v514_v41, 0.0 }
 0x2a4   :  { %v541_v40 = vpack.c.bf16 %v534_v39, %v533_v38  ;;  %v535_v52 = vsel %vm519_vm10, %v511_v45, %v527_v36  ;;  %v536_v53 = vsel %vm520_vm11, %v512_v48, %v528_v37  ;;  %v529_v54 = vmul.f32 0.17, %v513_v49 }
 0x2a5   :  { %v2585_v55 = vpack.c.bf16 %v536_v53, %v535_v52  ;;  %v530_v56 = vmul.f32 0.17, %v514_v41  ;;  %vm523_vm14 = vcmp.ge.f32.partialorder %v515_v50, 0.0  ;;  %vm524_vm15 = vcmp.ge.f32.partialorder %v516_v51, 0.0 }
 0x2a6   :  { %834 = vmatmul.mubr.bf16.vlgmr.msra.gmra.mrb[8].mxu0 %v541_v40  ;;  %907 = vmatmul.mubr.bf16.vlgmr.msra.gmra.mrb[8].mxu1 %v541_v40  ;;  %v537_v57 = vsel %vm521_vm12, %v513_v49, %v529_v54  ;;  %v531_v58 = vmul.f32 0.17, %v515_v50  ;;  %v532_v59 = vmul.f32 0.17, %v516_v51 }
 0x2a7   :  { %2145 = vmatpush3.bf16.msra.mxu0 %v2581_v35  ;;  %2208 = vmatpush3.bf16.msra.mxu1 %v2581_v35  ;;  %v538_v60 = vsel %vm522_vm13, %v514_v41, %v530_v56  ;;  %v2292_v35 = vld [vmem:[#allocation8 + $0xb0] ss:$20 sps:$4 sm:$0xff]  }
 0x2a8   :  { %2146 = vmatprep.subr.bf16.mxu0 %v2289_v46  ;;  %2201 = vmatprep.subr.bf16.mxu1 %v2289_v46  ;;  %v543_v62 = vpack.c.bf16 %v538_v60, %v537_v57  ;;  %v539_v63 = vsel %vm523_vm14, %v515_v50, %v531_v58  ;;  %v540_v0 = vsel %vm524_vm15, %v516_v51, %v532_v59 }
 0x2a9   :  { %843 = vmatprep.mubr.bf16.mxu0 %v2463_v32  ;;  %916 = vmatprep.mubr.bf16.mxu1 %v2463_v32  ;;  %v544_v1 = vpack.c.bf16 %v540_v0, %v539_v63 }
 0x2ab   :  { %2147 = vmatpush3.bf16.msra.mxu0 %v2289_v46  ;;  %2209 = vmatpush3.bf16.msra.mxu1 %v2289_v46 }
 0x2ac   :  { %2148 = vmatprep.subr.bf16.mxu0 %v2290_v61  ;;  %2202 = vmatprep.subr.bf16.mxu1 %v2290_v61 }
 0x2ae   :  { %844 = vmatmul.mubr.bf16.gmra.mrb[12].mxu0 %v2585_v55  ;;  %917 = vmatmul.mubr.bf16.gmra.mrb[12].mxu1 %v2585_v55 }
 0x2af   :  { %2149 = vmatpush3.bf16.msra.mxu0 %v2290_v61  ;;  %2210 = vmatpush3.bf16.msra.mxu1 %v2290_v61 }
 0x2b0   :  { %2150 = vmatprep.subr.bf16.mxu0 %v2291_v2  ;;  %2203 = vmatprep.subr.bf16.mxu1 %v2291_v2 }
 0x2b1   :  { %853 = vmatprep.mubr.bf16.mxu0 %v2463_v32  ;;  %926 = vmatprep.mubr.bf16.mxu1 %v2463_v32 }
 0x2b3   :  { %2151 = vmatpush3.bf16.msra.mxu0 %v2291_v2  ;;  %2211 = vmatpush3.bf16.msra.mxu1 %v2291_v2 }
 0x2b4   :  { %2152 = vmatprep.subr.bf16.mxu0 %v2292_v35  ;;  %2204 = vmatprep.subr.bf16.mxu1 %v2292_v35 }
 0x2b6   :  { %854 = vmatmul.mubr.bf16.gmra.mrb[16].mxu0 %v543_v62  ;;  %927 = vmatmul.mubr.bf16.gmra.mrb[16].mxu1 %v543_v62 }
 0x2b7   :  { %2153 = vmatpush3.bf16.msra.mxu0 %v2292_v35  ;;  %2212 = vmatpush3.bf16.msra.mxu1 %v2292_v35 }
 0x2b8   :  { %2154 = vmatprep.subr.bf16.mxu0 %v2293_v3  ;;  %2205 = vmatprep.subr.bf16.mxu1 %v2293_v3 }
 0x2b9   :  { %863 = vmatprep.mubr.bf16.mxu0 %v2463_v32  ;;  %936 = vmatprep.mubr.bf16.mxu1 %v2463_v32 }
 0x2bb   :  { %2155 = vmatpush3.bf16.msra.mxu0 %v2293_v3  ;;  %2213 = vmatpush3.bf16.msra.mxu1 %v2293_v3 }
 0x2bc   :  { %2156 = vmatprep.subr.bf16.mxu0 %v2294_v4  ;;  %2206 = vmatprep.subr.bf16.mxu1 %v2294_v4 }
 0x2be   :  { %864 = vmatmul.mubr.bf16.gmra.mrb[20].mxu0 %v544_v1  ;;  %937 = vmatmul.mubr.bf16.gmra.mrb[20].mxu1 %v544_v1 }
 0x2bf   :  { %2157 = vmatpush3.bf16.msra.mxu0 %v2294_v4  ;;  %2214 = vmatpush3.bf16.msra.mxu1 %v2294_v4 }
 0x2c0   :  { %2160 = vmatprep.mubr.bf16.mxu0 %v541_v40  ;;  %2164 = vmatprep.mubr.bf16.mxu1 %v543_v62 }
 0x2c1   :  { %2158 = vmatprep.subr.bf16.mxu0 %v2295_v5  ;;  %2207 = vmatprep.subr.bf16.mxu1 %v2295_v5 }
 0x2c3   :  { %2159 = vmatpush3.bf16.msra.mxu0 %v2295_v5  ;;  %2215 = vmatpush3.bf16.msra.mxu1 %v2295_v5 }
 0x2c6   :  { %2161 = vmatmul.mubr.bf16.vlgmr.msra.gmra.mrb[24].mxu0 %v2585_v55  ;;  %2165 = vmatmul.mubr.bf16.vlgmr.msra.gmra.mrb[24].mxu1 %v544_v1 }
 0x379   :  { %v2599_v6 = vpop.f32.mrb[8].mxu0  ;;  %v2601_v32 = vpop.f32.mrb[8].mxu1 }
 0x37a   :  { %v2603_v7 = vpop.f32.mrb[9].mxu0  ;;  %v2605_v8 = vpop.f32.mrb[9].mxu1  ;;  %v1082_v9 = vmul.f32 %v2599_v6, %v2599_v6  ;;  %v1084_v10 = vmul.f32 %v2601_v32, %v2601_v32 }
 0x37b   :  { %v1083_v11 = vmul.f32 %v2603_v7, %v2603_v7  ;;  %v1085_v12 = vmul.f32 %v2605_v8, %v2605_v8  ;;  %v2615_v13 = vpop.f32.mrb[10].mxu0  ;;  %v2617_v14 = vpop.f32.mrb[10].mxu1 }
 0x37c   :  { %v1012_v15 = vadd.f32 %v2615_v13, %v2599_v6  ;;  %v1087_v16 = vmul.f32 %v2615_v13, %v2615_v13  ;;  %v1038_v17 = vadd.f32 %v2617_v14, %v2601_v32  ;;  %v1089_v18 = vmul.f32 %v2617_v14, %v2617_v14  ;;  %v2627_v19 = vpop.f32.mrb[11].mxu0  ;;  %v2629_v20 = vpop.f32.mrb[11].mxu1 }
 0x37d   :  { %v1025_v21 = vadd.f32 %v2627_v19, %v2603_v7  ;;  %v1088_v22 = vmul.f32 %v2627_v19, %v2627_v19  ;;  %v1051_v23 = vadd.f32 %v2629_v20, %v2605_v8  ;;  %v1090_v24 = vmul.f32 %v2629_v20, %v2629_v20 }
 0x37e   :  { %v1122_v25 = vadd.f32 %v1087_v16, %v1082_v9  ;;  %v1148_v26 = vadd.f32 %v1089_v18, %v1084_v10 }
 0x37f   :  { %v1135_v27 = vadd.f32 %v1088_v22, %v1083_v11  ;;  %v1161_v28 = vadd.f32 %v1090_v24, %v1085_v12 }
 0x381   :  { %v2639_v29 = vpop.f32.mrb[12].mxu0  ;;  %v2641_v30 = vpop.f32.mrb[12].mxu1 }
 0x382   :  { %v1013_v31 = vadd.f32 %v1012_v15, %v2639_v29  ;;  %v1092_v33 = vmul.f32 %v2639_v29, %v2639_v29  ;;  %v1039_v34 = vadd.f32 %v1038_v17, %v2641_v30  ;;  %v1094_v41 = vmul.f32 %v2641_v30, %v2641_v30  ;;  %v2649_v43 = vpop.f32.mrb[13].mxu0  ;;  %v2651_v44 = vpop.f32.mrb[13].mxu1 }
 0x383   :  { %v1026_v45 = vadd.f32 %v1025_v21, %v2649_v43  ;;  %v1093_v48 = vmul.f32 %v2649_v43, %v2649_v43  ;;  %v1052_v49 = vadd.f32 %v1051_v23, %v2651_v44  ;;  %v1095_v50 = vmul.f32 %v2651_v44, %v2651_v44  ;;  %v2659_v51 = vpop.f32.mrb[14].mxu0  ;;  %v2661_v42 = vpop.f32.mrb[14].mxu1 }
 0x384   :  { %v1123_v47 = vadd.f32 %v1122_v25, %v1092_v33  ;;  %v1149_v36 = vadd.f32 %v1148_v26, %v1094_v41  ;;  %v1014_v37 = vadd.f32 %v1013_v31, %v2659_v51  ;;  %v1097_v38 = vmul.f32 %v2659_v51, %v2659_v51  ;;  %v2666_v39 = vpop.f32.mrb[15].mxu0  ;;  %v2668_v40 = vpop.f32.mrb[15].mxu1 }
 0x385   :  { %v1136_v46 = vadd.f32 %v1135_v27, %v1093_v48  ;;  %v1162_v52 = vadd.f32 %v1161_v28, %v1095_v50  ;;  %v1040_v53 = vadd.f32 %v1039_v34, %v2661_v42  ;;  %v1099_v54 = vmul.f32 %v2661_v42, %v2661_v42 }
 0x386   :  { %v1124_v55 = vadd.f32 %v1123_v47, %v1097_v38  ;;  %v1027_v56 = vadd.f32 %v1026_v45, %v2666_v39  ;;  %v1098_v57 = vmul.f32 %v2666_v39, %v2666_v39  ;;  %v1053_v58 = vadd.f32 %v1052_v49, %v2668_v40 }
 0x387   :  { %v1150_v59 = vadd.f32 %v1149_v36, %v1099_v54  ;;  %v1100_v60 = vmul.f32 %v2668_v40, %v2668_v40 }
 0x388   :  { %v1137_v61 = vadd.f32 %v1136_v46, %v1098_v57 }
 0x389   :  { %v1163_v62 = vadd.f32 %v1162_v52, %v1100_v60  ;;  %v2679_v63 = vpop.f32.mrb[16].mxu0  ;;  %v2681_v0 = vpop.f32.mrb[16].mxu1 }
 0x38a   :  { %v1015_v1 = vadd.f32 %v1014_v37, %v2679_v63  ;;  %v1102_v2 = vmul.f32 %v2679_v63, %v2679_v63  ;;  %v1041_v35 = vadd.f32 %v1040_v53, %v2681_v0  ;;  %v1104_v3 = vmul.f32 %v2681_v0, %v2681_v0  ;;  %v2689_v4 = vpop.f32.mrb[17].mxu0  ;;  %v2691_v5 = vpop.f32.mrb[17].mxu1 }
 0x38b   :  { %v1028_v9 = vadd.f32 %v1027_v56, %v2689_v4  ;;  %v1103_v10 = vmul.f32 %v2689_v4, %v2689_v4  ;;  %v1054_v11 = vadd.f32 %v1053_v58, %v2691_v5  ;;  %v1105_v12 = vmul.f32 %v2691_v5, %v2691_v5  ;;  %v2699_v15 = vpop.f32.mrb[18].mxu0  ;;  %v2701_v16 = vpop.f32.mrb[18].mxu1 }
 0x38c   :  { %v1125_v17 = vadd.f32 %v1124_v55, %v1102_v2  ;;  %v1151_v18 = vadd.f32 %v1150_v59, %v1104_v3  ;;  %v1016_v21 = vadd.f32 %v1015_v1, %v2699_v15  ;;  %v1107_v22 = vmul.f32 %v2699_v15, %v2699_v15  ;;  %v2706_v23 = vpop.f32.mrb[19].mxu0  ;;  %v2708_v24 = vpop.f32.mrb[19].mxu1 }
 0x38d   :  { %v1138_v25 = vadd.f32 %v1137_v61, %v1103_v10  ;;  %v1164_v26 = vadd.f32 %v1163_v62, %v1105_v12  ;;  %v1042_v27 = vadd.f32 %v1041_v35, %v2701_v16  ;;  %v1109_v28 = vmul.f32 %v2701_v16, %v2701_v16 }
 0x38e   :  { %v1126_v31 = vadd.f32 %v1125_v17, %v1107_v22  ;;  %v1029_v33 = vadd.f32 %v1028_v9, %v2706_v23  ;;  %v1108_v34 = vmul.f32 %v2706_v23, %v2706_v23  ;;  %v1055_v41 = vadd.f32 %v1054_v11, %v2708_v24 }
 0x38f   :  { %v1152_v45 = vadd.f32 %v1151_v18, %v1109_v28  ;;  %v1110_v48 = vmul.f32 %v2708_v24, %v2708_v24 }
 0x390   :  { %v1139_v49 = vadd.f32 %v1138_v25, %v1108_v34 }
 0x391   :  { %v1165_v50 = vadd.f32 %v1164_v26, %v1110_v48  ;;  %v2719_v47 = vpop.f32.mrb[20].mxu0  ;;  %v2721_v36 = vpop.f32.mrb[20].mxu1 }
 0x392   :  { %3532 = vst [vmem:[#allocation16_spill] sm:$0xff] %v2719_v47  ;;  %3533 = vst [vmem:[#allocation17_spill] sm:$0xff] %v2721_v36  ;;  %v1017_v37 = vadd.f32 %v1016_v21, %v2719_v47  ;;  %v1112_v38 = vmul.f32 %v2719_v47, %v2719_v47  ;;  %v1043_v46 = vadd.f32 %v1042_v27, %v2721_v36  ;;  %v2729_v53 = vpop.f32.mrb[21].mxu0  ;;  %v2731_v54 = vpop.f32.mrb[21].mxu1 }
 0x393   :  { %v1114_v52 = vmul.f32 %v2721_v36, %v2721_v36  ;;  %3534 = vst [vmem:[#allocation18_spill] sm:$0xff] %v2729_v53  ;;  %3535 = vst [vmem:[#allocation19_spill] sm:$0xff] %v2731_v54  ;;  %v1030_v55 = vadd.f32 %v1029_v33, %v2729_v53  ;;  %v1113_v56 = vmul.f32 %v2729_v53, %v2729_v53  ;;  %v2739_v59 = vpop.f32.mrb[22].mxu0  ;;  %v2741_v60 = vpop.f32.mrb[22].mxu1 }
 0x394   :  { %v1056_v57 = vadd.f32 %v1055_v41, %v2731_v54  ;;  %v1115_v58 = vmul.f32 %v2731_v54, %v2731_v54  ;;  %3536 = vst [vmem:[#allocation20_spill] sm:$0xff] %v2739_v59  ;;  %3537 = vst [vmem:[#allocation21_spill] sm:$0xff] %v2741_v60  ;;  %v1127_v61 = vadd.f32 %v1126_v31, %v1112_v38  ;;  %v2746_v35 = vpop.f32.mrb[23].mxu0  ;;  %v2748_v3 = vpop.f32.mrb[23].mxu1 }
 0x395   :  { %v1153_v62 = vadd.f32 %v1152_v45, %v1114_v52  ;;  %v1018_v1 = vadd.f32 %v1017_v37, %v2739_v59  ;;  %v1117_v2 = vmul.f32 %v2739_v59, %v2739_v59  ;;  %3538 = vst [vmem:[#allocation22_spill] sm:$0xff] %v2746_v35  ;;  %3539 = vst [vmem:[#allocation23_spill] sm:$0xff] %v2748_v3 }
 0x396   :  { %v1140_v9 = vadd.f32 %v1139_v49, %v1113_v56  ;;  %v1166_v10 = vadd.f32 %v1165_v50, %v1115_v58  ;;  %v1044_v11 = vadd.f32 %v1043_v46, %v2741_v60  ;;  %v1119_v12 = vmul.f32 %v2741_v60, %v2741_v60 }
 0x397   :  { %v1019_v17 = vrot.slane %v1018_v1, 4  ;;  %v1128_v18 = vadd.f32 %v1127_v61, %v1117_v2  ;;  %v1031_v21 = vadd.f32 %v1030_v55, %v2746_v35  ;;  %v1118_v22 = vmul.f32 %v2746_v35, %v2746_v35 }
 0x398   :  { %v1045_v25 = vrot.slane %v1044_v11, 4  ;;  %v1154_v26 = vadd.f32 %v1153_v62, %v1119_v12  ;;  %v1057_v27 = vadd.f32 %v1056_v57, %v2748_v3  ;;  %v1120_v28 = vmul.f32 %v2748_v3, %v2748_v3 }
 0x399   :  { %v1020_v31 = vadd.f32 %v1019_v17, %v1018_v1  ;;  %v1129_v33 = vrot.slane %v1128_v18, 4  ;;  %v1032_v34 = vrot.slane %v1031_v21, 4  ;;  %v1141_v41 = vadd.f32 %v1140_v9, %v1118_v22  ;;  %v2759_v37 = vpop.f32.mrb[24].mxu0  ;;  %v2761_v38 = vpop.f32.mrb[24].mxu1 }
 0x39a   :  { %v1046_v45 = vadd.f32 %v1045_v25, %v1044_v11  ;;  %v1155_v48 = vrot.slane %v1154_v26, 4  ;;  %v1058_v49 = vrot.slane %v1057_v27, 4  ;;  %v1167_v50 = vadd.f32 %v1166_v10, %v1120_v28  ;;  %v2763_v57 = vpop.f32.mrb[25].mxu0  ;;  %v2765_v58 = vpop.f32.mrb[25].mxu1 }
 0x39b   :  { %v1021_v46 = vrot.slane %v1020_v31, 2  ;;  %v1130_v52 = vadd.f32 %v1129_v33, %v1128_v18  ;;  %v1033_v55 = vadd.f32 %v1032_v34, %v1031_v21  ;;  %v1142_v56 = vrot.slane %v1141_v41, 4  ;;  %v2767_v9 = vpop.f32.mrb[26].mxu0  ;;  %v2769_v11 = vpop.f32.mrb[26].mxu1 }
 0x39c   :  { %v1047_v61 = vrot.slane %v1046_v45, 2  ;;  %v1156_v62 = vadd.f32 %v1155_v48, %v1154_v26  ;;  %v1059_v1 = vadd.f32 %v1058_v49, %v1057_v27  ;;  %v1168_v2 = vrot.slane %v1167_v50, 4  ;;  %v2771_v25 = vpop.f32.mrb[27].mxu0  ;;  %v2773_v18 = vpop.f32.mrb[27].mxu1 }
 0x39d   :  { %v1022_v10 = vadd.f32 %v1021_v46, %v1020_v31  ;;  %v1131_v12 = vrot.slane %v1130_v52, 2  ;;  %v1034_v17 = vrot.slane %v1033_v55, 2  ;;  %v1143_v22 = vadd.f32 %v1142_v56, %v1141_v41 }
 0x39e   :  { %v1048_v21 = vadd.f32 %v1047_v61, %v1046_v45  ;;  %v1157_v28 = vrot.slane %v1156_v62, 2  ;;  %v1060_v33 = vrot.slane %v1059_v1, 2  ;;  %v1169_v34 = vadd.f32 %v1168_v2, %v1167_v50 }
 0x39f   :  { %v1023_v3 = vrot.slane %v1022_v10, 1  ;;  %v1132_v26 = vadd.f32 %v1131_v12, %v1130_v52  ;;  %v1035_v27 = vadd.f32 %v1034_v17, %v1033_v55  ;;  %v1144_v48 = vrot.slane %v1143_v22, 2 }
 0x3a0   :  { %v1049_v49 = vrot.slane %v1048_v21, 1  ;;  %v1158_v60 = vadd.f32 %v1157_v28, %v1156_v62  ;;  %v1061_v35 = vadd.f32 %v1060_v33, %v1059_v1  ;;  %v1170_v59 = vrot.slane %v1169_v34, 2 }
 0x3a1   :  { %v1024_v31 = vadd.f32 %v1023_v3, %v1022_v10  ;;  %v1133_v46 = vrot.slane %v1132_v26, 1  ;;  %v1036_v54 = vrot.slane %v1035_v27, 1  ;;  %v1145_v41 = vadd.f32 %v1144_v48, %v1143_v22 }
 0x3a2   :  { %v1050_v56 = vadd.f32 %v1049_v49, %v1048_v21  ;;  %v1159_v36 = vrot.slane %v1158_v60, 1  ;;  %v1062_v53 = vrot.slane %v1061_v35, 1  ;;  %v1171_v47 = vadd.f32 %v1170_v59, %v1169_v34 }
 0x3a3   :  { %v2775_v45 = vmul.f32 0.015625, %v1024_v31  ;;  %v1134_v61 = vadd.f32 %v1133_v46, %v1132_v26  ;;  %v1037_v50 = vadd.f32 %v1036_v54, %v1035_v27  ;;  %v1146_v2 = vrot.slane %v1145_v41, 1 }
 0x3a4   :  { %v2777_v52 = vmul.f32 0.015625, %v1050_v56  ;;  %v1160_v55 = vadd.f32 %v1159_v36, %v1158_v60  ;;  %v1063_v12 = vadd.f32 %v1062_v53, %v1061_v35  ;;  %v1172_v62 = vrot.slane %v1171_v47, 1 }
 0x3a5   :  { %v1187_v1 = vmul.f32 0.015625, %v1134_v61  ;;  %v1192_v3 = vmul.f32 %v2775_v45, %v2775_v45  ;;  %v2781_v10 = vmul.f32 0.015625, %v1037_v50  ;;  %v1147_v17 = vadd.f32 %v1146_v2, %v1145_v41 }
 0x3a6   :  { %v1189_v22 = vmul.f32 0.015625, %v1160_v55  ;;  %v1194_v59 = vmul.f32 %v2777_v52, %v2777_v52  ;;  %v2785_v21 = vmul.f32 0.015625, %v1063_v12  ;;  %v1173_v54 = vadd.f32 %v1172_v62, %v1171_v47 }
 0x3a7   :  { %v1197_v28 = vsub.f32 %v1187_v1, %v1192_v3  ;;  %v1188_v33 = vmul.f32 0.015625, %v1147_v17  ;;  %v1193_v36 = vmul.f32 %v2781_v10, %v2781_v10  ;;  %v1086_v49 = vmul.f32 %v2763_v57, %v2763_v57 }
 0x3a8   :  { %v1199_v53 = vsub.f32 %v1189_v22, %v1194_v59  ;;  %v1190_v60 = vmul.f32 0.015625, %v1173_v54  ;;  %v1195_v35 = vmul.f32 %v2785_v21, %v2785_v21  ;;  %v1064_v47 = vadd.f32 %v2771_v25, %v2763_v57 }
 0x3a9   :  { %v1202_v34 = vmax.f32 %v1197_v28, 0.0  ;;  %v1198_v26 = vsub.f32 %v1188_v33, %v1193_v36  ;;  %v1091_v41 = vmul.f32 %v2771_v25, %v2771_v25  ;;  %v1096_v50 = vmul.f32 %v2759_v37, %v2759_v37 }
 0x3aa   :  { %v1204_v27 = vmax.f32 %v1199_v53, 0.0  ;;  %v1200_v48 = vsub.f32 %v1190_v60, %v1195_v35  ;;  %v1065_v55 = vadd.f32 %v2759_v37, %v1064_v47  ;;  %v1101_v1 = vmul.f32 %v2767_v9, %v2767_v9 }
 0x3ab   :  { %v1207_v31 = vadd.f32 1e-05, %v1202_v34  ;;  %v1203_v46 = vmax.f32 %v1198_v26, 0.0  ;;  %v1174_v12 = vadd.f32 %v1091_v41, %v1086_v49  ;;  %v2464_v22 = vmov 1966171168  }
 0x3ac   :  { %v1209_v56 = vadd.f32 1e-05, %v1204_v27  ;;  %v1205_v61 = vmax.f32 %v1200_v48, 0.0  ;;  %v1066_v17 = vadd.f32 %v2767_v9, %v1065_v55  ;;  %v1225_v59 = vunpack.c.l.s4 %v2464_v22 }
 0x3ad   :  { %2300 = vrsqrt.f32 %v1207_v31  ;;  %v1208_v2 = vadd.f32 1e-05, %v1203_v46  ;;  %v1175_v3 = vadd.f32 %v1174_v12, %v1096_v50  ;;  %v3502_v54 = vlaneseq }
 0x3ae   :  { %2302 = vrsqrt.f32 %v1209_v56  ;;  %v1210_v62 = vadd.f32 1e-05, %v1205_v61  ;;  %v1106_v28 = vmul.f32 %v2765_v58, %v2765_v58  ;;  %v1067_v33 = vadd.f32 %v1066_v17, %v2765_v58 }
 0x3af   :  { %2304 = vrsqrt.f32 %v1208_v2  ;;  %v1176_v36 = vadd.f32 %v1175_v3, %v1101_v1  ;;  %v1111_v60 = vmul.f32 %v2773_v18, %v2773_v18  ;;  %v1226_v34 = vunpack.c.0.s8 %v1225_v59 }
 0x3b0   :  { %2306 = vrsqrt.f32 %v1210_v62  ;;  %v1068_v53 = vadd.f32 %v1067_v33, %v2773_v18  ;;  %v1228_v26 = vshrl.u32 %v3502_v54, 7  ;;  %v1116_v27 = vmul.f32 %v2761_v38, %v2761_v38 }
 0x3b1   :  { %v1177_v35 = vadd.f32 %v1176_v36, %v1106_v28  ;;  %v1121_v46 = vmul.f32 %v2769_v11, %v2769_v11 }
 0x3b2   :  { %v1069_v48 = vadd.f32 %v2761_v38, %v1068_v53  ;;  %v2816_v61 = vsub.s32 %v1226_v34, %v1228_v26 }
 0x3b3   :  { %v1178_v49 = vadd.f32 %v1177_v35, %v1111_v60 }
 0x3b4   :  { %v1070_v47 = vadd.f32 %v2769_v11, %v1069_v48 }
 0x3b5   :  { %v1179_v41 = vadd.f32 %v1178_v49, %v1116_v27 }
 0x3b6   :  { %v1071_v2 = vrot.slane %v1070_v47, 4 }
 0x3b7   :  { %v2301_v31 = vpop.eup %2300  ;;  %v1180_v55 = vadd.f32 %v1179_v41, %v1121_v46 }
 0x3b8   :  { %v2303_v56 = vpop.eup %2302  ;;  %v1072_v3 = vadd.f32 %v1071_v2, %v1070_v47 }
 0x3b9   :  { %v2305_v50 = vpop.eup %2304  ;;  %v1181_v17 = vrot.slane %v1180_v55, 4 }
 0x3ba   :  { %v2307_v12 = vpop.eup %2306  ;;  %v1222_v62 = vcombine.low %v2301_v31, %v2305_v50  ;;  %v1073_v28 = vrot.slane %v1072_v3, 2 }
 0x3bb   :  { %v1223_v1 = vcombine.low %v2303_v56, %v2307_v12  ;;  %v1182_v33 = vadd.f32 %v1181_v17, %v1180_v55  ;;  %v95_v12 = vld [vmem:[#allocation10 + $0x4] ss:$8 sm:$0xf] }
 0x3bc   :  { %v1230_v22 = vrot.slane %v1222_v62, %v2816_v61  ;;  %v1074_v53 = vadd.f32 %v1073_v28, %v1072_v3  ;;  %v96_v62 = vld [vmem:[#allocation10 + $0x4] ss:$8 sm:$0x10]  ;;  %v109_v3 = vld [vmem:[#allocation10 + $0x29] ss:$8 sm:$0x10] }
 0x3bd   :  { %v1237_v59 = vrot.slane %v1223_v1, %v2816_v61  ;;  %v1183_v60 = vrot.slane %v1182_v33, 2  ;;  %v108_v1 = vld [vmem:[#allocation10 + $0x29] ss:$8 sm:$0xf] }
 0x3be   :  { %v1075_v35 = vrot.slane %v1074_v53, 1  ;;  %v2823_v28 = vld [vmem:[#allocation10 + $0x5] ss:$8 sm:$0xf] }
 0x3bf   :  { %v1245_v36 = vcombine.low %v1230_v22, %v1237_v59  ;;  %v1184_v34 = vadd.f32 %v1183_v60, %v1182_v33  ;;  %v97_v22 = vor.u32 %v96_v62, %v95_v12  ;;  %v2825_v33 = vsub.s32 0, %v1228_v26  ;;  %v2829_v60 = vld [vmem:[#allocation10 + $0x5] ss:$8 sm:$0x10] }
 0x3c0   :  { %v1076_v27 = vadd.f32 %v1075_v35, %v1074_v53  ;;  %v2827_v53 = vor.u32 %v109_v3, %v108_v1 }
 0x3c1   :  { %v1185_v48 = vrot.slane %v1184_v34, 1  ;;  %v1252_v17 = vrot.slane %v1245_v36, %v2816_v61 }
 0x3c2   :  { %v1081_v49 = vmul.f32 0.015625, %v1076_v27  ;;  %v2833_v27 = vsub.s32 2, %v1228_v26 }
 0x3c3   :  { %v1186_v46 = vadd.f32 %v1185_v48, %v1184_v34  ;;  %v2831_v34 = vsub.s32 1, %v1228_v26  ;;  %v2835_v48 = vsub.s32 3, %v1228_v26 }
 0x3c4   :  { %v1196_v31 = vmul.f32 %v1081_v49, %v1081_v49  ;;  %v2856_v1 = vrot.slane %v2827_v53, %v2833_v27 }
 0x3c5   :  { %v1191_v41 = vmul.f32 0.015625, %v1186_v46  ;;  %3540 = vst [vmem:[#allocation24_spill] sm:$0xff] %v2835_v48  ;;  %v2837_v46 = vsub.s32 4, %v1228_v26  ;;  %v2860_v3 = vrot.slane %v2827_v53, %v2835_v48 }
 0x3c6   :  { %3543 = vst [vmem:[#allocation27_spill] sm:$0xff] %v2856_v1 }
 0x3c7   :  { %v1201_v56 = vsub.f32 %v1191_v41, %v1196_v31  ;;  %3541 = vst [vmem:[#allocation25_spill] sm:$0xff] %v2837_v46  ;;  %v104_v41 = vld [vmem:[#allocation10 + $0x28] ss:$8 sm:$0xf]  ;;  %3544 = vst [vmem:[#allocation28_spill] sm:$0xff] %v2860_v3 }
 0x3c8   :  { %v105_v31 = vld [vmem:[#allocation10 + $0x28] ss:$8 sm:$0x10] }
 0x3c9   :  { %v1206_v47 = vmax.f32 %v1201_v56, 0.0  ;;  %v101_v56 = vor.u32 %v2829_v60, %v2823_v28 }
 0x3cb   :  { %v1211_v50 = vadd.f32 1e-05, %v1206_v47  ;;  %v2843_v47 = vrot.slane %v2827_v53, %v2825_v33 }
 0x3cd   :  { %2308 = vrsqrt.f32 %v1211_v50  ;;  %v2847_v50 = vrot.slane %v2827_v53, %v2831_v34 }
 0x3cf   :  { %3542 = vst [vmem:[#allocation26_spill] sm:$0xff] %v2847_v50 }
 0x3d7   :  { %v2309_v2 = vpop.eup %2308 }
 0x3d8   :  { %v1244_v55 = vrot.slane %v2309_v2, %v2816_v61 }
 0x3da   :  { %v1259_v59 = vrot.slane %v1244_v55, %v2816_v61 }
 0x3dc   :  { %v1260_v35 = vcombine.low %v1252_v17, %v1259_v59  ;;  %v2862_v17 = vor.u32 %v105_v31, %v104_v41 }
 0x3de   :  { %v1262_v36 = vmul.f32 %v1260_v35, %v97_v22  ;;  %3545 = vst [vmem:[#allocation29_spill] sm:$0xff] %v2862_v17 }
 0x3e0   :  { %v1267_v2 = vrot.slane %v1262_v36, %v2825_v33  ;;  %v1271_v12 = vrot.slane %v1262_v36, %v2831_v34  ;;  %v1275_v26 = vrot.slane %v1262_v36, %v2833_v27  ;;  %v1279_v62 = vrot.slane %v1262_v36, %v2835_v48 }
 0x3e1   :  { %v1283_v55 = vrot.slane %v1262_v36, %v2837_v46 }
 0x3e2   :  { %v1289_v22 = vmul.f32 %v1267_v2, %v2775_v45  ;;  %v1290_v59 = vmul.f32 %v1271_v12, %v2781_v10  ;;  %v1291_v28 = vmul.f32 %v1275_v26, %v2777_v52  ;;  %v1292_v60 = vmul.f32 %v1279_v62, %v2785_v21 }
 0x3e3   :  { %v1293_v35 = vmul.f32 %v1283_v55, %v1081_v49  ;;  %v2869_v36 = vmul.f32 %v1283_v55, %v2773_v18  ;;  %v1350_v54 = vmul.f32 %v1267_v2, %v2639_v29  ;;  %v1351_v1 = vmul.f32 %v1271_v12, %v2649_v43 }
 0x3e4   :  { %v1299_v50 = vcombine.low %v1289_v22, %v1290_v59  ;;  %v1300_v3 = vcombine.low %v1291_v28, %v1292_v60  ;;  %v1352_v41 = vmul.f32 %v1275_v26, %v2641_v30  ;;  %v1353_v45 = vmul.f32 %v1279_v62, %v2651_v44 }
 0x3e5   :  { %v1321_v10 = vrot.slane %v1293_v35, %v2816_v61  ;;  %v1354_v52 = vmul.f32 %v2759_v37, %v1283_v55  ;;  %v1355_v21 = vmul.f32 %v1267_v2, %v2659_v51  ;;  %v1356_v49 = vmul.f32 %v1271_v12, %v2666_v39 }
 0x3e6   :  { %v1307_v18 = vrot.slane %v1299_v50, %v2816_v61  ;;  %v1314_v29 = vrot.slane %v1300_v3, %v2816_v61  ;;  %v1357_v43 = vmul.f32 %v1275_v26, %v2661_v42  ;;  %v1358_v31 = vmul.f32 %v1279_v62, %v2668_v40 }
 0x3e7   :  { %v1336_v30 = vrot.slane %v1321_v10, %v2816_v61  ;;  %v1359_v44 = vmul.f32 %v2767_v9, %v1283_v55  ;;  %v2886_v22 = vmul.f32 %v1267_v2, %v2599_v6  ;;  %v2889_v37 = vmul.f32 %v1271_v12, %v2603_v7 }
 0x3e8   :  { %v1322_v51 = vcombine.low %v1307_v18, %v1314_v29  ;;  %v2892_v39 = vmul.f32 %v1275_v26, %v2601_v32  ;;  %v2895_v50 = vmul.f32 %v1279_v62, %v2605_v8  ;;  %v2898_v42 = vmul.f32 %v1283_v55, %v2763_v57 }
 0x3e9   :  { %v2901_v40 = vmul.f32 %v1267_v2, %v2615_v13  ;;  %v2904_v9 = vmul.f32 %v1271_v12, %v2627_v19  ;;  %v2907_v6 = vmul.f32 %v1275_v26, %v2617_v14  ;;  %v2910_v7 = vmul.f32 %v1279_v62, %v2629_v20 }
 0x3ea   :  { %v1329_v32 = vrot.slane %v1322_v51, %v2816_v61  ;;  %v2914_v8 = vmul.f32 %v1283_v55, %v2771_v25  ;;  %v2917_v57 = vmul.f32 %v1267_v2, %v2679_v63  ;;  %v2920_v13 = vmul.f32 %v1271_v12, %v2689_v4  ;;  %v3552_v51 = vld [vmem:[#allocation21_spill] sm:$0xff] }
 0x3eb   :  { %v2923_v19 = vmul.f32 %v1275_v26, %v2681_v0  ;;  %v2926_v14 = vmul.f32 %v1279_v62, %v2691_v5  ;;  %v2929_v20 = vmul.f32 %v1283_v55, %v2765_v58  ;;  %v2932_v61 = vmul.f32 %v1267_v2, %v2699_v15  ;;  %v3546_v0 = vld [vmem:[#allocation16_spill] sm:$0xff]  ;;  %v3547_v5 = vld [vmem:[#allocation18_spill] sm:$0xff]  ;;  %v3548_v58 = vld [vmem:[#allocation17_spill] sm:$0xff] }
 0x3ec   :  { %v1337_v25 = vcombine.low %v1329_v32, %v1336_v30  ;;  %v2935_v3 = vmul.f32 %v1271_v12, %v2706_v23  ;;  %v2938_v63 = vmul.f32 %v1275_v26, %v2701_v16  ;;  %v2941_v4 = vmul.f32 %v1279_v62, %v2708_v24  ;;  %v3549_v15 = vld [vmem:[#allocation19_spill] sm:$0xff]  ;;  %v3550_v16 = vld [vmem:[#allocation20_spill] sm:$0xff]  ;;  %v3551_v24 = vld [vmem:[#allocation22_spill] sm:$0xff] }
 0x3ed   :  { %v2944_v59 = vmul.f32 %v1267_v2, %v3546_v0  ;;  %v2947_v28 = vmul.f32 %v1271_v12, %v3547_v5  ;;  %v2950_v60 = vmul.f32 %v1275_v26, %v3548_v58  ;;  %v2953_v35 = vmul.f32 %v1279_v62, %v3549_v15  ;;  %v3554_v0 = vld [vmem:[#allocation23_spill] sm:$0xff] }
 0x3ee   :  { %v1339_v23 = vsub.f32 %v101_v56, %v1337_v25  ;;  %v2956_v10 = vmul.f32 %v2761_v38, %v1283_v55  ;;  %v2959_v18 = vmul.f32 %v1267_v2, %v3550_v16  ;;  %v2962_v29 = vmul.f32 %v1271_v12, %v3551_v24 }
 0x3ef   :  { %v2966_v30 = vrot.slane %v2827_v53, %v2837_v46  ;;  %v2969_v32 = vmul.f32 %v1275_v26, %v3552_v51  ;;  %v2972_v5 = vmul.f32 %v1279_v62, %v3554_v0  ;;  %v2975_v56 = vmul.f32 %v2769_v11, %v1283_v55 }
 0x3f0   :  { %v2978_v38 = vrot.slane %v1339_v23, %v2825_v33  ;;  %v2981_v2 = vrot.slane %v1339_v23, %v2831_v34  ;;  %v2984_v12 = vrot.slane %v1339_v23, %v2833_v27  ;;  %v2987_v53 = vrot.slane %v1339_v23, %v2835_v48 }
 0x3f1   :  { %3553 = vst [vmem:[#allocation16_spill] sm:$0xff] %v2969_v32  ;;  %3555 = vst [vmem:[#allocation18_spill] sm:$0xff] %v2972_v5  ;;  %v2990_v26 = vrot.slane %v1339_v23, %v2837_v46  ;;  %v2994_v62 = vrot.slane %v2862_v17, %v2825_v33  ;;  %v2998_v11 = vrot.slane %v2862_v17, %v2831_v34 }
 0x3f2   :  { %3556 = vst [vmem:[#allocation17_spill] sm:$0xff] %v2975_v56  ;;  %v3002_v55 = vrot.slane %v2862_v17, %v2833_v27  ;;  %v1416_v25 = vadd.f32 %v2978_v38, %v1350_v54  ;;  %v1417_v58 = vadd.f32 %v2981_v2, %v1351_v1  ;;  %v1418_v15 = vadd.f32 %v2984_v12, %v1352_v41 }
 0x3f3   :  { %3557 = vst [vmem:[#allocation19_spill] sm:$0xff] %v2994_v62  ;;  %3558 = vst [vmem:[#allocation20_spill] sm:$0xff] %v2998_v11  ;;  %v1419_v23 = vadd.f32 %v2987_v53, %v1353_v45  ;;  %v1435_v33 = vadd.f32 %v2990_v26, %v2869_v36  ;;  %v1420_v16 = vadd.f32 %v2990_v26, %v1354_v52 }
 0x3f4   :  { %3559 = vst [vmem:[#allocation22_spill] sm:$0xff] %v3002_v55  ;;  %v1421_v34 = vadd.f32 %v2978_v38, %v1355_v21  ;;  %v1422_v24 = vadd.f32 %v2981_v2, %v1356_v49  ;;  %v1423_v27 = vadd.f32 %v2984_v12, %v1357_v43  ;;  %v1424_v51 = vadd.f32 %v2987_v53, %v1358_v31 }
 0x3f5   :  { %v1425_v54 = vadd.f32 %v2990_v26, %v1359_v44  ;;  %vm1456_vm0 = vcmp.ge.f32.partialorder %v1416_v25, 0.0  ;;  %vm1475_vm1 = vcmp.ge.f32.partialorder %v1435_v33, 0.0  ;;  %v1515_v1 = vmul.f32 0.17, %v1435_v33 }
 0x3f6   :  { %vm1457_vm2 = vcmp.ge.f32.partialorder %v1417_v58, 0.0  ;;  %vm1458_vm3 = vcmp.ge.f32.partialorder %v1418_v15, 0.0  ;;  %vm1459_vm4 = vcmp.ge.f32.partialorder %v1419_v23, 0.0  ;;  %vm1460_vm5 = vcmp.ge.f32.partialorder %v1420_v16, 0.0 }
 0x3f7   :  { %vm1461_vm6 = vcmp.ge.f32.partialorder %v1421_v34, 0.0  ;;  %vm1462_vm7 = vcmp.ge.f32.partialorder %v1422_v24, 0.0  ;;  %v3016_v36 = vsel %vm1475_vm1, %v1435_v33, %v1515_v1  ;;  %vm1463_vm8 = vcmp.ge.f32.partialorder %v1423_v27, 0.0 }
 0x3f8   :  { %vm1464_vm9 = vcmp.ge.f32.partialorder %v1424_v51, 0.0  ;;  %vm1465_vm10 = vcmp.ge.f32.partialorder %v1425_v54, 0.0  ;;  %v1496_v41 = vmul.f32 0.17, %v1416_v25  ;;  %v1497_v45 = vmul.f32 0.17, %v1417_v58 }
 0x3f9   :  { %v1498_v52 = vmul.f32 0.17, %v1418_v15  ;;  %v3020_v21 = vadd.f32 %v2978_v38, %v2886_v22  ;;  %v1499_v49 = vmul.f32 0.17, %v1419_v23  ;;  %v1500_v43 = vmul.f32 0.17, %v1420_v16 }
 0x3fa   :  { %v1501_v31 = vmul.f32 0.17, %v1421_v34  ;;  %v3024_v44 = vadd.f32 %v2981_v2, %v2889_v37  ;;  %v1502_v0 = vmul.f32 0.17, %v1422_v24  ;;  %v1503_v33 = vmul.f32 0.17, %v1423_v27 }
 0x3fb   :  { %v1504_v1 = vmul.f32 0.17, %v1424_v51  ;;  %v1536_v55 = vsel %vm1456_vm0, %v1416_v25, %v1496_v41  ;;  %v1505_v46 = vmul.f32 0.17, %v1425_v54  ;;  %v1537_v17 = vsel %vm1457_vm2, %v1417_v58, %v1497_v45 }
 0x3fc   :  { %v1538_v48 = vsel %vm1458_vm3, %v1418_v15, %v1498_v52  ;;  %v1539_v22 = vsel %vm1459_vm4, %v1419_v23, %v1499_v49  ;;  %v1540_v11 = vsel %vm1460_vm5, %v1420_v16, %v1500_v43  ;;  %v1541_v62 = vsel %vm1461_vm6, %v1421_v34, %v1501_v31 }
 0x3fd   :  { %v1542_v56 = vsel %vm1462_vm7, %v1422_v24, %v1502_v0  ;;  %v1543_v37 = vsel %vm1463_vm8, %v1423_v27, %v1503_v33  ;;  %v1544_v5 = vsel %vm1464_vm9, %v1424_v51, %v1504_v1  ;;  %v1545_v32 = vsel %vm1465_vm10, %v1425_v54, %v1505_v46 }
 0x3fe   :  { %v3036_v25 = vpack.c.bf16 %v1541_v62, %v1536_v55  ;;  %v3038_v41 = vpack.c.bf16 %v1542_v56, %v1537_v17  ;;  %v3040_v58 = vpack.c.bf16 %v1543_v37, %v1538_v48  ;;  %v3042_v15 = vpack.c.bf16 %v1544_v5, %v1539_v22  ;;  %v3560_v62 = vld [vmem:[#allocation26_spill] sm:$0xff]  ;;  %v3561_v55 = vld [vmem:[#allocation27_spill] sm:$0xff] }
 0x3ff   :  { %v3044_v23 = vpack.c.bf16 %v1545_v32, %v1540_v11  ;;  %v1408_v16 = vadd.f32 %v2984_v12, %v2892_v39  ;;  %v1409_v46 = vadd.f32 %v2987_v53, %v2895_v50  ;;  %v1410_v17 = vadd.f32 %v2990_v26, %v2898_v42 }
 0x400   :  { %v3518_v34 = vunpack.c.l.bf16 %v3036_v25  ;;  %v3516_v24 = vunpack.c.l.bf16 %v3038_v41  ;;  %v3515_v48 = vunpack.c.l.bf16 %v3040_v58  ;;  %v3514_v5 = vunpack.c.l.bf16 %v3042_v15 }
 0x401   :  { %v3513_v32 = vunpack.c.l.bf16 %v3044_v23  ;;  %v1411_v56 = vadd.f32 %v2978_v38, %v2901_v40  ;;  %v1412_v42 = vadd.f32 %v2981_v2, %v2904_v9  ;;  %v1413_v11 = vadd.f32 %v2984_v12, %v2907_v6  ;;  %v3562_v40 = vld [vmem:[#allocation28_spill] sm:$0xff] }
 0x402   :  { %v1776_v39 = vmul.f32 %v2843_v47, %v3518_v34  ;;  %v1777_v50 = vmul.f32 %v3560_v62, %v3516_v24  ;;  %v1778_v27 = vmul.f32 %v3561_v55, %v3515_v48  ;;  %v1779_v51 = vmul.f32 %v3562_v40, %v3514_v5 }
 0x403   :  { %v1780_v54 = vmul.f32 %v2966_v30, %v3513_v32  ;;  %v1414_v45 = vadd.f32 %v2987_v53, %v2910_v7  ;;  %v1415_v9 = vadd.f32 %v2990_v26, %v2914_v8  ;;  %vm1446_vm11 = vcmp.ge.f32.partialorder %v3020_v21, 0.0 }
 0x404   :  { %v1818_v52 = vadd.f32 %v1777_v50, %v1776_v39  ;;  %vm1447_vm12 = vcmp.ge.f32.partialorder %v3024_v44, 0.0  ;;  %vm1448_vm13 = vcmp.ge.f32.partialorder %v1408_v16, 0.0  ;;  %vm1449_vm14 = vcmp.ge.f32.partialorder %v1409_v46, 0.0 }
 0x405   :  { %vm1450_vm15 = vcmp.ge.f32.partialorder %v1410_v17, 0.0  ;;  %vm1451_vm0 = vcmp.ge.f32.partialorder %v1411_v56, 0.0  ;;  %vm1452_vm1 = vcmp.ge.f32.partialorder %v1412_v42, 0.0  ;;  %vm1453_vm2 = vcmp.ge.f32.partialorder %v1413_v11, 0.0 }
 0x406   :  { %v1819_v6 = vadd.f32 %v1818_v52, %v1778_v27  ;;  %vm1454_vm3 = vcmp.ge.f32.partialorder %v1414_v45, 0.0  ;;  %vm1455_vm4 = vcmp.ge.f32.partialorder %v1415_v9, 0.0  ;;  %v1486_v49 = vmul.f32 0.17, %v3020_v21 }
 0x407   :  { %v1487_v7 = vmul.f32 0.17, %v3024_v44  ;;  %v3524_v43 = vunpack.c.h.bf16 %v3036_v25  ;;  %v1488_v31 = vmul.f32 0.17, %v1408_v16  ;;  %v1489_v0 = vmul.f32 0.17, %v1409_v46 }
 0x408   :  { %v1820_v8 = vadd.f32 %v1819_v6, %v1779_v51  ;;  %v1490_v33 = vmul.f32 0.17, %v1410_v17  ;;  %v1491_v1 = vmul.f32 0.17, %v1411_v56  ;;  %v1492_v22 = vmul.f32 0.17, %v1412_v42 }
 0x409   :  { %v1493_v37 = vmul.f32 0.17, %v1413_v11  ;;  %v1526_v39 = vsel %vm1446_vm11, %v3020_v21, %v1486_v49  ;;  %v1494_v27 = vmul.f32 0.17, %v1414_v45  ;;  %v1495_v52 = vmul.f32 0.17, %v1415_v9 }
 0x40a   :  { %v1821_v50 = vadd.f32 %v1820_v8, %v1780_v54  ;;  %v1527_v32 = vsel %vm1447_vm12, %v3024_v44, %v1487_v7  ;;  %v1528_v5 = vsel %vm1448_vm13, %v1408_v16, %v1488_v31  ;;  %v1529_v51 = vsel %vm1449_vm14, %v1409_v46, %v1489_v0 }
 0x40b   :  { %v1530_v6 = vsel %vm1450_vm15, %v1410_v17, %v1490_v33  ;;  %v1531_v48 = vsel %vm1451_vm0, %v1411_v56, %v1491_v1  ;;  %v1532_v24 = vsel %vm1452_vm1, %v1412_v42, %v1492_v22  ;;  %v1533_v21 = vsel %vm1453_vm2, %v1413_v11, %v1493_v37 }
 0x40c   :  { %1822 = vadd.xlane.f32.xlu1 %v1821_v50  ;;  %v1534_v54 = vsel %vm1454_vm3, %v1414_v45, %v1494_v27  ;;  %v1535_v49 = vsel %vm1455_vm4, %v1415_v9, %v1495_v52  ;;  %v3101_v8 = vpack.c.bf16 %v1531_v48, %v1526_v39  ;;  %v3103_v44 = vpack.c.bf16 %v1532_v24, %v1527_v32 }
 0x40d   :  { %v3105_v16 = vpack.c.bf16 %v1533_v21, %v1528_v5  ;;  %v3107_v46 = vpack.c.bf16 %v1534_v54, %v1529_v51  ;;  %v3109_v17 = vpack.c.bf16 %v1535_v49, %v1530_v6  ;;  %v3523_v56 = vunpack.c.h.bf16 %v3038_v41 }
 0x40e   :  { %v3520_v42 = vunpack.c.h.bf16 %v3040_v58  ;;  %v3519_v11 = vunpack.c.h.bf16 %v3042_v15  ;;  %v1586_v45 = vunpack.c.l.bf16 %v3101_v8  ;;  %v1587_v9 = vunpack.c.l.bf16 %v3103_v44 }
 0x40f   :  { %v3526_v48 = vunpack.c.l.bf16 %v3105_v16  ;;  %v3522_v24 = vunpack.c.l.bf16 %v3107_v46  ;;  %v3517_v5 = vunpack.c.l.bf16 %v3109_v17  ;;  %v3521_v32 = vunpack.c.h.bf16 %v3044_v23 }
 0x410   :  { %v1781_v7 = vmul.f32 %v2843_v47, %v3524_v43  ;;  %v1782_v31 = vmul.f32 %v3560_v62, %v3523_v56  ;;  %v1766_v0 = vmul.f32 %v2843_v47, %v1586_v45  ;;  %v1767_v33 = vmul.f32 %v3560_v62, %v1587_v9 }
 0x411   :  { %v1768_v1 = vmul.f32 %v3561_v55, %v3526_v48  ;;  %v1769_v22 = vmul.f32 %v3562_v40, %v3522_v24  ;;  %v1770_v37 = vmul.f32 %v2966_v30, %v3517_v5  ;;  %v1783_v39 = vmul.f32 %v3561_v55, %v3520_v42 }
 0x412   :  { %v1784_v50 = vmul.f32 %v3562_v40, %v3519_v11  ;;  %v1785_v27 = vmul.f32 %v2966_v30, %v3521_v32  ;;  %v1806_v52 = vadd.f32 %v1767_v33, %v1766_v0  ;;  %v1824_v51 = vadd.f32 %v1782_v31, %v1781_v7 }
 0x413   :  { %v1591_v6 = vunpack.c.h.bf16 %v3101_v8  ;;  %v1592_v21 = vunpack.c.h.bf16 %v3103_v44  ;;  %v1593_v54 = vunpack.c.h.bf16 %v3105_v16  ;;  %v1594_v49 = vunpack.c.h.bf16 %v3107_v46 }
 0x414   :  { %v3525_v5 = vunpack.c.h.bf16 %v3109_v17  ;;  %v1426_v34 = vadd.f32 %v2978_v38, %v2917_v57  ;;  %v1807_v11 = vadd.f32 %v1806_v52, %v1768_v1  ;;  %v1825_v42 = vadd.f32 %v1824_v51, %v1783_v39 }
 0x415   :  { %v1771_v0 = vmul.f32 %v2843_v47, %v1591_v6  ;;  %v1772_v7 = vmul.f32 %v3560_v62, %v1592_v21  ;;  %v1773_v31 = vmul.f32 %v3561_v55, %v1593_v54  ;;  %v1774_v33 = vmul.f32 %v3562_v40, %v1594_v49 }
 0x416   :  { %v1775_v57 = vmul.f32 %v2966_v30, %v3525_v5  ;;  %v1427_v1 = vadd.f32 %v2981_v2, %v2920_v13  ;;  %v1808_v39 = vadd.f32 %v1807_v11, %v1769_v22  ;;  %v1826_v52 = vadd.f32 %v1825_v42, %v1784_v50 }
 0x417   :  { %v1812_v51 = vadd.f32 %v1772_v7, %v1771_v0  ;;  %v1428_v32 = vadd.f32 %v2984_v12, %v2923_v19  ;;  %v1429_v24 = vadd.f32 %v2987_v53, %v2926_v14  ;;  %v1430_v56 = vadd.f32 %v2990_v26, %v2929_v20 }
 0x418   :  { %v1431_v43 = vadd.f32 %v2978_v38, %v2932_v61  ;;  %v1432_v5 = vadd.f32 %v2981_v2, %v2935_v3  ;;  %v1809_v48 = vadd.f32 %v1808_v39, %v1770_v37  ;;  %v1827_v13 = vadd.f32 %v1826_v52, %v1785_v27 }
 0x419   :  { %v1813_v11 = vadd.f32 %v1812_v51, %v1773_v31  ;;  %v1433_v42 = vadd.f32 %v2984_v12, %v2938_v63  ;;  %v1434_v19 = vadd.f32 %v2987_v53, %v2941_v4  ;;  %vm1466_vm5 = vcmp.ge.f32.partialorder %v1426_v34, 0.0 }
 0x41a   :  { %vm1467_vm6 = vcmp.ge.f32.partialorder %v1427_v1, 0.0  ;;  %vm1468_vm7 = vcmp.ge.f32.partialorder %v1428_v32, 0.0  ;;  %1810 = vadd.xlane.f32.xlu0 %v1809_v48  ;;  %1828 = vadd.xlane.f32.xlu1 %v1827_v13  ;;  %vm1469_vm8 = vcmp.ge.f32.partialorder %v1429_v24, 0.0  ;;  %vm1470_vm9 = vcmp.ge.f32.partialorder %v1430_v56, 0.0 }
 0x41b   :  { %v1814_v14 = vadd.f32 %v1813_v11, %v1774_v33  ;;  %vm1471_vm10 = vcmp.ge.f32.partialorder %v1431_v43, 0.0  ;;  %vm1472_vm11 = vcmp.ge.f32.partialorder %v1432_v5, 0.0  ;;  %vm1473_vm12 = vcmp.ge.f32.partialorder %v1433_v42, 0.0 }
 0x41c   :  { %vm1474_vm13 = vcmp.ge.f32.partialorder %v1434_v19, 0.0  ;;  %v1506_v20 = vmul.f32 0.17, %v1426_v34  ;;  %v1507_v3 = vmul.f32 0.17, %v1427_v1  ;;  %v3573_v8 = vunpack.c.h.bf16 %v3036_v25 }
 0x41d   :  { %v1815_v61 = vadd.f32 %v1814_v14, %v1775_v57  ;;  %v1508_v22 = vmul.f32 0.17, %v1428_v32  ;;  %v1509_v63 = vmul.f32 0.17, %v1429_v24  ;;  %v1510_v37 = vmul.f32 0.17, %v1430_v56 }
 0x41e   :  { %v1511_v50 = vmul.f32 0.17, %v1431_v43  ;;  %v1512_v4 = vmul.f32 0.17, %v1432_v5  ;;  %v1546_v27 = vsel %vm1466_vm5, %v1426_v34, %v1506_v20  ;;  %v1513_v48 = vmul.f32 0.17, %v1433_v42 }
 0x41f   :  { %1816 = vadd.xlane.f32.xlu0 %v1815_v61  ;;  %v1514_v0 = vmul.f32 0.17, %v1434_v19  ;;  %v1547_v7 = vsel %vm1467_vm6, %v1427_v1, %v1507_v3  ;;  %v1548_v31 = vsel %vm1468_vm7, %v1428_v32, %v1508_v22  ;;  %v1549_v33 = vsel %vm1469_vm8, %v1429_v24, %v1509_v63 }
 0x420   :  { %v1550_v39 = vsel %vm1470_vm9, %v1430_v56, %v1510_v37  ;;  %v1551_v57 = vsel %vm1471_vm10, %v1431_v43, %v1511_v50  ;;  %v1552_v52 = vsel %vm1472_vm11, %v1432_v5, %v1512_v4  ;;  %v1553_v51 = vsel %vm1473_vm12, %v1433_v42, %v1513_v48 }
 0x421   :  { %v1554_v13 = vsel %vm1474_vm13, %v1434_v19, %v1514_v0  ;;  %v3197_v34 = vpack.c.bf16 %v1551_v57, %v1546_v27  ;;  %v3199_v11 = vpack.c.bf16 %v1552_v52, %v1547_v7  ;;  %v3201_v14 = vpack.c.bf16 %v1553_v51, %v1548_v31 }
 0x422   :  { %v3203_v1 = vpack.c.bf16 %v1554_v13, %v1549_v33  ;;  %v3206_v24 = vpack.c.bf16 %v3016_v36, %v1550_v39  ;;  %v1436_v43 = vadd.f32 %v2978_v38, %v2944_v59  ;;  %v1437_v39 = vadd.f32 %v2981_v2, %v2947_v28 }
 0x423   :  { %v1611_v56 = vunpack.c.h.bf16 %v3197_v34  ;;  %v1612_v5 = vunpack.c.h.bf16 %v3199_v11  ;;  %v1606_v32 = vunpack.c.l.bf16 %v3197_v34  ;;  %v1607_v42 = vunpack.c.l.bf16 %v3199_v11 }
 0x424   :  { %v1613_v19 = vunpack.c.h.bf16 %v3201_v14  ;;  %v1614_v20 = vunpack.c.h.bf16 %v3203_v1  ;;  %v3530_v61 = vunpack.c.h.bf16 %v3206_v24  ;;  %v3529_v36 = vunpack.c.l.bf16 %v3201_v14 }
 0x425   :  { %v1791_v59 = vmul.f32 %v2843_v47, %v1611_v56  ;;  %v1792_v3 = vmul.f32 %v3560_v62, %v1612_v5  ;;  %v3528_v22 = vunpack.c.l.bf16 %v3203_v1  ;;  %v3527_v63 = vunpack.c.l.bf16 %v3206_v24 }
 0x426   :  { %v1793_v37 = vmul.f32 %v3561_v55, %v1613_v19  ;;  %v1794_v50 = vmul.f32 %v3562_v40, %v1614_v20  ;;  %v1795_v4 = vmul.f32 %v2966_v30, %v3530_v61  ;;  %v1786_v27 = vmul.f32 %v2843_v47, %v1606_v32  ;;  %v3565_v61 = vld [vmem:[#allocation17_spill] sm:$0xff] }
 0x427   :  { %v1836_v48 = vadd.f32 %v1792_v3, %v1791_v59  ;;  %v1787_v0 = vmul.f32 %v3560_v62, %v1607_v42  ;;  %v1788_v7 = vmul.f32 %v3561_v55, %v3529_v36  ;;  %v1789_v31 = vmul.f32 %v3562_v40, %v3528_v22  ;;  %v3563_v22 = vld [vmem:[#allocation16_spill] sm:$0xff]  ;;  %v3564_v36 = vld [vmem:[#allocation18_spill] sm:$0xff] }
 0x428   :  { %v1790_v33 = vmul.f32 %v2966_v30, %v3527_v63  ;;  %v1438_v57 = vadd.f32 %v2984_v12, %v2950_v60  ;;  %v1439_v52 = vadd.f32 %v2987_v53, %v2953_v35  ;;  %v1440_v59 = vadd.f32 %v2990_v26, %v2956_v10 }
 0x429   :  { %v1837_v51 = vadd.f32 %v1836_v48, %v1793_v37  ;;  %v1830_v13 = vadd.f32 %v1787_v0, %v1786_v27  ;;  %v1441_v3 = vadd.f32 %v2978_v38, %v2959_v18  ;;  %v1442_v63 = vadd.f32 %v2981_v2, %v2962_v29 }
 0x42a   :  { %v1443_v28 = vadd.f32 %v2984_v12, %v3563_v22  ;;  %v1444_v60 = vadd.f32 %v2987_v53, %v3564_v36  ;;  %v1445_v35 = vadd.f32 %v2990_v26, %v3565_v61  ;;  %vm1476_vm14 = vcmp.ge.f32.partialorder %v1436_v43, 0.0 }
 0x42b   :  { %v1838_v37 = vadd.f32 %v1837_v51, %v1794_v50  ;;  %v1831_v27 = vadd.f32 %v1830_v13, %v1788_v7  ;;  %vm1477_vm15 = vcmp.ge.f32.partialorder %v1437_v39, 0.0  ;;  %vm1478_vm0 = vcmp.ge.f32.partialorder %v1438_v57, 0.0 }
 0x42c   :  { %vm1479_vm1 = vcmp.ge.f32.partialorder %v1439_v52, 0.0  ;;  %vm1480_vm2 = vcmp.ge.f32.partialorder %v1440_v59, 0.0  ;;  %vm1481_vm3 = vcmp.ge.f32.partialorder %v1441_v3, 0.0  ;;  %vm1482_vm4 = vcmp.ge.f32.partialorder %v1442_v63, 0.0 }
 0x42d   :  { %v1839_v10 = vadd.f32 %v1838_v37, %v1795_v4  ;;  %v1832_v18 = vadd.f32 %v1831_v27, %v1789_v31  ;;  %vm1483_vm5 = vcmp.ge.f32.partialorder %v1443_v28, 0.0  ;;  %vm1484_vm6 = vcmp.ge.f32.partialorder %v1444_v60, 0.0 }
 0x42e   :  { %vm1485_vm7 = vcmp.ge.f32.partialorder %v1445_v35, 0.0  ;;  %v1516_v29 = vmul.f32 0.17, %v1436_v43  ;;  %v1517_v38 = vmul.f32 0.17, %v1437_v39  ;;  %v3574_v44 = vunpack.c.h.bf16 %v3038_v41 }
 0x42f   :  { %1840 = vadd.xlane.f32.xlu1 %v1839_v10  ;;  %v1833_v2 = vadd.f32 %v1832_v18, %v1790_v33  ;;  %v1518_v12 = vmul.f32 0.17, %v1438_v57  ;;  %v1519_v53 = vmul.f32 0.17, %v1439_v52  ;;  %v1520_v26 = vmul.f32 0.17, %v1440_v59 }
 0x430   :  { %v1521_v61 = vmul.f32 0.17, %v1441_v3  ;;  %v1522_v36 = vmul.f32 0.17, %v1442_v63  ;;  %v1523_v22 = vmul.f32 0.17, %v1443_v28  ;;  %v1556_v50 = vsel %vm1476_vm14, %v1436_v43, %v1516_v29 }
 0x431   :  { %1834 = vadd.xlane.f32.xlu0 %v1833_v2  ;;  %v1524_v48 = vmul.f32 0.17, %v1444_v60  ;;  %v1525_v4 = vmul.f32 0.17, %v1445_v35  ;;  %v1557_v0 = vsel %vm1477_vm15, %v1437_v39, %v1517_v38  ;;  %v1558_v7 = vsel %vm1478_vm0, %v1438_v57, %v1518_v12 }
 0x432   :  { %v1559_v31 = vsel %vm1479_vm1, %v1439_v52, %v1519_v53  ;;  %v1560_v51 = vsel %vm1480_vm2, %v1440_v59, %v1520_v26  ;;  %v1561_v33 = vsel %vm1481_vm3, %v1441_v3, %v1521_v61  ;;  %v1562_v13 = vsel %vm1482_vm4, %v1442_v63, %v1522_v36  ;;  %v3566_v3 = vld [vmem:[#allocation19_spill] sm:$0xff]  ;;  %v3568_v36 = vld [vmem:[#allocation24_spill] sm:$0xff] }
 0x433   :  { %v1563_v37 = vsel %vm1483_vm5, %v1443_v28, %v1523_v22  ;;  %v1564_v27 = vsel %vm1484_vm6, %v1444_v60, %v1524_v48  ;;  %v1565_v43 = vsel %vm1485_vm7, %v1445_v35, %v1525_v4  ;;  %v3278_v10 = vpack.c.bf16 %v1561_v33, %v1556_v50  ;;  %v3567_v60 = vld [vmem:[#allocation20_spill] sm:$0xff]  ;;  %v3569_v22 = vld [vmem:[#allocation29_spill] sm:$0xff] }
 0x434   :  { %v3280_v18 = vpack.c.bf16 %v1562_v13, %v1557_v0  ;;  %v3282_v39 = vpack.c.bf16 %v1563_v37, %v1558_v7  ;;  %v3284_v57 = vpack.c.bf16 %v1564_v27, %v1559_v31  ;;  %v3286_v52 = vpack.c.bf16 %v1565_v43, %v1560_v51  ;;  %v3570_v48 = vld [vmem:[#allocation25_spill] sm:$0xff] }
 0x435   :  { %v1621_v59 = vunpack.c.h.bf16 %v3278_v10  ;;  %v1616_v63 = vunpack.c.l.bf16 %v3278_v10  ;;  %v1657_v28 = vmul.f32 %v3566_v3, %v1591_v6  ;;  %v1658_v35 = vmul.f32 %v3567_v60, %v1592_v21 }
 0x436   :  { %v1622_v29 = vunpack.c.h.bf16 %v3280_v18  ;;  %v1623_v38 = vunpack.c.h.bf16 %v3282_v39  ;;  %v1624_v2 = vunpack.c.h.bf16 %v3284_v57  ;;  %v3531_v12 = vunpack.c.h.bf16 %v3286_v52 }
 0x437   :  { %v1801_v53 = vmul.f32 %v2843_v47, %v1621_v59  ;;  %v1617_v26 = vunpack.c.l.bf16 %v3280_v18  ;;  %v1618_v6 = vunpack.c.l.bf16 %v3282_v39  ;;  %v1619_v61 = vunpack.c.l.bf16 %v3284_v57 }
 0x438   :  { %v1802_v21 = vmul.f32 %v3560_v62, %v1622_v29  ;;  %v3311_v50 = vrot.slane %v3569_v22, %v3568_v36  ;;  %v3315_v4 = vrot.slane %v3569_v22, %v3570_v48  ;;  %v1803_v0 = vmul.f32 %v3561_v55, %v1623_v38 }
 0x439   :  { %v1620_v7 = vunpack.c.l.bf16 %v3286_v52  ;;  %v1796_v31 = vmul.f32 %v2843_v47, %v1616_v63  ;;  %v1797_v51 = vmul.f32 %v3560_v62, %v1617_v26  ;;  %v1804_v33 = vmul.f32 %v3562_v40, %v1624_v2  ;;  %v3571_v62 = vld [vmem:[#allocation22_spill] sm:$0xff] }
 0x43a   :  { %v1805_v13 = vmul.f32 %v2966_v30, %v3531_v12  ;;  %v1848_v37 = vadd.f32 %v1802_v21, %v1801_v53  ;;  %v1798_v27 = vmul.f32 %v3561_v55, %v1618_v6  ;;  %v1799_v47 = vmul.f32 %v3562_v40, %v1619_v61 }
 0x43b   :  { %v1842_v43 = vadd.f32 %v1797_v51, %v1796_v31  ;;  %v1659_v36 = vmul.f32 %v3571_v62, %v1593_v54  ;;  %v1698_v22 = vadd.f32 %v1658_v35, %v1657_v28  ;;  %v1660_v12 = vmul.f32 %v3311_v50, %v1594_v49 }
 0x43c   :  { %v1849_v48 = vadd.f32 %v1848_v37, %v1803_v0  ;;  %v1652_v53 = vmul.f32 %v3566_v3, %v1586_v45  ;;  %v1653_v55 = vmul.f32 %v3567_v60, %v1587_v9  ;;  %v1800_v40 = vmul.f32 %v2966_v30, %v1620_v7 }
 0x43d   :  { %v1843_v21 = vadd.f32 %v1842_v43, %v1798_v27  ;;  %v1699_v54 = vadd.f32 %v1698_v22, %v1659_v36  ;;  %v3572_v28 = vunpack.c.l.bf16 %v3105_v16  ;;  %v1667_v45 = vmul.f32 %v3566_v3, %v3573_v8 }
 0x43e   :  { %v1850_v0 = vadd.f32 %v1849_v48, %v1804_v33  ;;  %v1692_v49 = vadd.f32 %v1653_v55, %v1652_v53  ;;  %v1668_v9 = vmul.f32 %v3567_v60, %v3574_v44  ;;  %v3575_v51 = vunpack.c.h.bf16 %v3109_v17 }
 0x43f   :  { %v1654_v35 = vmul.f32 %v3571_v62, %v3572_v28  ;;  %v1844_v31 = vadd.f32 %v1843_v21, %v1799_v47  ;;  %v1700_v37 = vadd.f32 %v1699_v54, %v1660_v12  ;;  %v3576_v16 = vunpack.c.l.bf16 %v3107_v46 }
 0x440   :  { %v1661_v30 = vmul.f32 %v3315_v4, %v3575_v51  ;;  %v1851_v33 = vadd.f32 %v1850_v0, %v1805_v13  ;;  %v3577_v36 = vunpack.c.h.bf16 %v3040_v58  ;;  %v1710_v48 = vadd.f32 %v1668_v9, %v1667_v45 }
 0x441   :  { %v1655_v27 = vmul.f32 %v3311_v50, %v3576_v16  ;;  %v1693_v43 = vadd.f32 %v1692_v49, %v1654_v35  ;;  %v1845_v53 = vadd.f32 %v1844_v31, %v1800_v40  ;;  %v3578_v47 = vunpack.c.l.bf16 %v3036_v25 }
 0x442   :  { %v1669_v22 = vmul.f32 %v3571_v62, %v3577_v36  ;;  %v1701_v55 = vadd.f32 %v1700_v37, %v1661_v30  ;;  %v3579_v28 = vunpack.c.l.bf16 %v3038_v41  ;;  %1852 = vadd.xlane.f32.xlu1 %v1851_v33  ;;  %v3580_v46 = vunpack.c.l.bf16 %v3109_v17 }
 0x443   :  { %v1662_v21 = vmul.f32 %v3566_v3, %v3578_v47  ;;  %v1694_v54 = vadd.f32 %v1693_v43, %v1655_v27  ;;  %v3581_v35 = vunpack.c.h.bf16 %v3042_v15  ;;  %1846 = vadd.xlane.f32.xlu0 %v1845_v53  ;;  %v3582_v25 = vunpack.c.l.bf16 %v3040_v58 }
 0x444   :  { %v1663_v12 = vmul.f32 %v3567_v60, %v3579_v28  ;;  %v1656_v13 = vmul.f32 %v3315_v4, %v3580_v46  ;;  %v1711_v40 = vadd.f32 %v1710_v48, %v1669_v22  ;;  %v1677_v41 = vmul.f32 %v3566_v3, %v1611_v56 }
 0x445   :  { %v1670_v0 = vmul.f32 %v3311_v50, %v3581_v35  ;;  %v1664_v49 = vmul.f32 %v3571_v62, %v3582_v25  ;;  %v1678_v17 = vmul.f32 %v3567_v60, %v1612_v5  ;;  %v3583_v44 = vunpack.c.h.bf16 %v3044_v23 }
 0x446   :  { %v1704_v8 = vadd.f32 %v1663_v12, %v1662_v21  ;;  %v1695_v45 = vadd.f32 %v1694_v54, %v1656_v13  ;;  %v3584_v51 = vunpack.c.l.bf16 %v3042_v15  ;;  %v1679_v37 = vmul.f32 %v3571_v62, %v1613_v19  ;;  %1702 = vadd.xlane.f32.xlu1 %v1701_v55 }
 0x447   :  { %v1671_v9 = vmul.f32 %v3315_v4, %v3583_v44  ;;  %v1712_v31 = vadd.f32 %v1711_v40, %v1670_v0  ;;  %v1722_v56 = vadd.f32 %v1678_v17, %v1677_v41  ;;  %v1672_v5 = vmul.f32 %v3566_v3, %v1606_v32 }
 0x448   :  { %v1665_v58 = vmul.f32 %v3311_v50, %v3584_v51  ;;  %v1705_v30 = vadd.f32 %v1704_v8, %v1664_v49  ;;  %v3585_v27 = vunpack.c.l.bf16 %v3044_v23  ;;  %v1673_v15 = vmul.f32 %v3567_v60, %v1607_v42  ;;  %1696 = vadd.xlane.f32.xlu0 %v1695_v45  ;;  %v102_v45 = vld [vmem:[#allocation10 + $0x6] ss:$0 sm:$0xff] }
 0x449   :  { %v1713_v16 = vadd.f32 %v1712_v31, %v1671_v9  ;;  %v1680_v19 = vmul.f32 %v3311_v50, %v1614_v20  ;;  %v1723_v36 = vadd.f32 %v1722_v56, %v1679_v37  ;;  %v1687_v34 = vmul.f32 %v3566_v3, %v1621_v59 }
 0x44a   :  { %v1666_v33 = vmul.f32 %v3315_v4, %v3585_v27  ;;  %v1706_v43 = vadd.f32 %v1705_v30, %v1665_v58  ;;  %v3586_v32 = vunpack.c.h.bf16 %v3206_v24  ;;  %v3587_v22 = vunpack.c.l.bf16 %v3201_v14 }
 0x44b   :  { %v1716_v42 = vadd.f32 %v1673_v15, %v1672_v5  ;;  %v1688_v48 = vmul.f32 %v3567_v60, %v1622_v29  ;;  %v1724_v20 = vadd.f32 %v1723_v36, %v1680_v19  ;;  %v3588_v55 = vunpack.c.l.bf16 %v3203_v1  ;;  %1714 = vadd.xlane.f32.xlu1 %v1713_v16 }
 0x44c   :  { %v1681_v23 = vmul.f32 %v3315_v4, %v3586_v32  ;;  %v1674_v11 = vmul.f32 %v3571_v62, %v3587_v22  ;;  %v1707_v53 = vadd.f32 %v1706_v43, %v1666_v33  ;;  %v1682_v59 = vmul.f32 %v3566_v3, %v1616_v63 }
 0x44d   :  { %v1675_v47 = vmul.f32 %v3311_v50, %v3588_v55  ;;  %v1689_v14 = vmul.f32 %v3571_v62, %v1623_v38  ;;  %v1734_v28 = vadd.f32 %v1688_v48, %v1687_v34  ;;  %v1683_v29 = vmul.f32 %v3567_v60, %v1617_v26 }
 0x44e   :  { %v1717_v21 = vadd.f32 %v1716_v42, %v1674_v11  ;;  %1708 = vadd.xlane.f32.xlu0 %v1707_v53  ;;  %v1725_v12 = vadd.f32 %v1724_v20, %v1681_v23  ;;  %v3589_v1 = vunpack.c.l.bf16 %v3206_v24  ;;  %v1690_v10 = vmul.f32 %v3311_v50, %v1624_v2 }
 0x44f   :  { %v1735_v3 = vadd.f32 %v1734_v28, %v1689_v14  ;;  %v1684_v38 = vmul.f32 %v3571_v62, %v1618_v6  ;;  %v1728_v13 = vadd.f32 %v1683_v29, %v1682_v59  ;;  %v3590_v18 = vunpack.c.h.bf16 %v3286_v52 }
 0x450   :  { %v1676_v46 = vmul.f32 %v3315_v4, %v3589_v1  ;;  %v1718_v63 = vadd.f32 %v1717_v21, %v1675_v47  ;;  %1726 = vadd.xlane.f32.xlu1 %v1725_v12  ;;  %v1685_v54 = vmul.f32 %v3311_v50, %v1619_v61  ;;  %v1686_v39 = vmul.f32 %v3315_v4, %v1620_v7 }
 0x451   :  { %v1691_v60 = vmul.f32 %v3315_v4, %v3590_v18  ;;  %v1736_v24 = vadd.f32 %v1735_v3, %v1690_v10  ;;  %v1729_v35 = vadd.f32 %v1728_v13, %v1684_v38  ;;  %v3591_v57 = vlaneseq }
 0x452   :  { %v1719_v26 = vadd.f32 %v1718_v63, %v1676_v46 }
 0x453   :  { %v1737_v2 = vadd.f32 %v1736_v24, %v1691_v60  ;;  %v1730_v6 = vadd.f32 %v1729_v35, %v1685_v54  ;;  %v1855_v17 = vand.u32 127, %v3591_v57 }
 0x454   :  { %1720 = vadd.xlane.f32.xlu0 %v1719_v26 }
 0x455   :  { %1738 = vadd.xlane.f32.xlu1 %v1737_v2  ;;  %v1731_v62 = vadd.f32 %v1730_v6, %v1686_v39  ;;  %vm1857_vm8 = vcmp.eq.s32.totalorder %v1855_v17, 1  ;;  %vm1856_vm9 = vcmp.eq.s32.totalorder %v1855_v17, 0 }
 0x458   :  { %1732 = vadd.xlane.f32.xlu0 %v1731_v62 }
 0x499   :  { %v1823_v0 = vpop.xlane.xlu1 %1822 }
 0x49a   :  { %v1860_v56 = vsel %vm1857_vm8, %v1823_v0, 0.0 }
 0x4a7   :  { %v1811_v40 = vpop.xlane.xlu0 %1810  ;;  %v1829_v25 = vpop.xlane.xlu1 %1828 }
 0x4a8   :  { %v1858_v7 = vsel %vm1857_vm8, %v1811_v40, 0.0  ;;  %v1861_v30 = vsel %vm1857_vm8, %v1829_v25, 0.0 }
 0x4ac   :  { %v1817_v49 = vpop.xlane.xlu0 %1816 }
 0x4ad   :  { %v1859_v52 = vsel %vm1857_vm8, %v1817_v49, 0.0 }
 0x4bc   :  { %v1841_v8 = vpop.xlane.xlu1 %1840 }
 0x4bd   :  { %v1863_v19 = vsel %vm1857_vm8, %v1841_v8, 0.0 }
 0x4be   :  { %v1835_v41 = vpop.xlane.xlu0 %1834 }
 0x4bf   :  { %v1862_v23 = vsel %vm1857_vm8, %v1835_v41, 0.0 }
 0x4cf   :  { %v1853_v61 = vpop.xlane.xlu1 %1852 }
 0x4d0   :  { %v1847_v50 = vpop.xlane.xlu0 %1846  ;;  %v1865_v48 = vsel %vm1857_vm8, %v1853_v61, 0.0 }
 0x4d1   :  { %v1864_v47 = vsel %vm1857_vm8, %v1847_v50, 0.0 }
 0x4d3   :  { %v1703_v4 = vpop.xlane.xlu1 %1702 }
 0x4d4   :  { %v1867_v44 = vsel %vm1856_vm9, %v1703_v4, %v1859_v52 }
 0x4d5   :  { %v1697_v9 = vpop.xlane.xlu0 %1696  ;;  %v1875_v31 = vadd.f32 %v1867_v44, %v102_v45 }
 0x4d6   :  { %v1866_v51 = vsel %vm1856_vm9, %v1697_v9, %v1858_v7 }
 0x4d7   :  { %v1874_v58 = vadd.f32 %v1866_v51, %v102_v45 }
 0x4d8   :  { %v1715_v37 = vpop.xlane.xlu1 %1714 }
 0x4d9   :  { %v2008_v5 = vpack.c.bf16 %v1875_v31, %v1874_v58  ;;  %v1869_v16 = vsel %vm1856_vm9, %v1715_v37, %v1861_v30 }
 0x4da   :  { %v1877_v33 = vadd.f32 %v1869_v16, %v102_v45 }
 0x4db   :  { %v1709_v27 = vpop.xlane.xlu0 %1708  ;;  %2009 = vst [vmem:[#allocation11] sm:$0xff] %v2008_v5  }
 0x4dc   :  { %v1868_v15 = vsel %vm1856_vm9, %v1709_v27, %v1860_v56 }
 0x4dd   :  { %v1876_v43 = vadd.f32 %v1868_v15, %v102_v45  ;;  %v1727_v36 = vpop.xlane.xlu1 %1726 }
 0x4de   :  { %v1871_v32 = vsel %vm1856_vm9, %v1727_v36, %v1863_v19 }
 0x4df   :  { %v2013_v34 = vpack.c.bf16 %v1877_v33, %v1876_v43  ;;  %v1879_v22 = vadd.f32 %v1871_v32, %v102_v45 }
 0x4e1   :  { %v1721_v11 = vpop.xlane.xlu0 %1720  ;;  %2025 = vst [vmem:[#allocation11 + $0x8] sm:$0xff] %v2013_v34  }
 0x4e2   :  { %v1870_v42 = vsel %vm1856_vm9, %v1721_v11, %v1862_v23  ;;  %v1739_v20 = vpop.xlane.xlu1 %1738 }
 0x4e3   :  { %v1878_v53 = vadd.f32 %v1870_v42, %v102_v45  ;;  %v1873_v55 = vsel %vm1856_vm9, %v1739_v20, %v1865_v48 }
 0x4e4   :  { %v1881_v21 = vadd.f32 %v1873_v55, %v102_v45 }
 0x4e5   :  { %v2018_v59 = vpack.c.bf16 %v1879_v22, %v1878_v53  ;;  %v1733_v14 = vpop.xlane.xlu0 %1732 }
 0x4e6   :  { %v1872_v28 = vsel %vm1856_vm9, %v1733_v14, %v1864_v47 }
 0x4e7   :  { %2026 = vst [vmem:[#allocation11 + $0x10] sm:$0xff] %v2018_v59   ;;  %v1880_v29 = vadd.f32 %v1872_v28, %v102_v45 }
 0x4e9   :  { %v2023_v12 = vpack.c.bf16 %v1881_v21, %v1880_v29 }
 0x4eb   :  { %2027 = vst [vmem:[#allocation11 + $0x18] sm:$0xff] %v2023_v12  }
 0x4ec   :  { %2431 = shalt.err (!%p2428_p2)
}
 0x4ed   :  { %s2432_s11 = scalar_lea.hbm %s3493_s5, 512 }
 0x4ee   :  { %p2433_p3 = scmp.ne.s32.totalorder %s3493_s5, %s2432_s11  ;;  %p2436_p4 = scmp.lt.u32.totalorder %s2432_s11, %s3493_s5 }
 0x4f0   :  { %p2438_p5 = pnand %p2436_p4, %p2433_p3 }
 0x4f2   :  { %2441 = shalt.err (!%p2438_p5)
}
 0x4f3   :  { %1933 = dma.vmem_to_hbm [thread:$0]  %s1928_s3, 512, %s3493_s5, [#allocation4], %s2458_s0, %s2458_s0, %s2459_s30  }
 0x4f4   :  { %2448 = dma.done.wait [#allocation4], 512  }
 0x4f5   :  { %2449 = vsyncadd [#allocation4], 4294966784 }
 0x4f6   :  { %1937 = vsyncpa [#allocation3], 1 }
 0x4f7   :  { %1938 = vsyncpa [#allocation6], 1 }
 0x4f8   :  { %1939 = vsyncpa [#allocation9], 1 }
 0x4f9   :  { %1940 = vsyncpa [#allocation4], 1 }

</bundles_post_ra>
